<compile_context>
chip_gen: v7x
topology: tpu7x:2x2x1
jax: 0.10.0
libtpu: 0.0.40
codegen_flags: <defaults>
</compile_context>

<pallas_src>
import functools

import numpy as np

import jax
import jax.numpy as jnp
from jax import lax
from jax.experimental import pallas as pl
from jax.experimental.pallas import tpu as pltpu

EPS = 1e-5
_LANE = 128


def _round_up(n, m):
    return ((n + m - 1) // m) * m


@functools.lru_cache(maxsize=1)
def _vmem_limit():
    # v5e/v6e have 128 MiB VMEM per core, v7x only 64 MiB; leave headroom.
    try:
        cap = int(pltpu.get_tpu_info().vmem_capacity_bytes)
    except Exception:
        cap = 64 * 1024 * 1024
    return int(min(cap - (16 << 20), 100 << 20))


def _pick_dt(D, H, W, m_target):
    """Largest divisor of D such that the matmul M = d_t*H*W stays <= target."""
    best = 1
    for cand in range(1, D + 1):
        if D % cand == 0 and cand * H * W <= max(m_target, H * W):
            best = cand
    return best


# ----------------------------------------------------------------------------
# Conv3d (3x3x3, stride 1, pad 1) via im2col single matmul per (n, d-tile).
# Optionally fuses a per-channel affine + ReLU on the *input* (BN of the
# previous layer) and/or emits per-batch BN partial sums for its own output.
# ----------------------------------------------------------------------------
def _conv3d_im2col_kernel(*refs, H, W, Cpad, Dout, d_t,
                          fuse_in_affine, compute_stats):
    # refs = (x, w, b, [in_scale, in_shift], out, [sum, sq], patch_scratch)
    x_ref, w_ref, b_ref = refs[0], refs[1], refs[2]
    i = 3
    if fuse_in_affine:
        sc_ref, sh_ref = refs[i], refs[i + 1]
        i += 2
    o_ref = refs[i]
    i += 1
    if compute_stats:
        sum_ref, sq_ref = refs[i], refs[i + 1]
        i += 2
    patch_ref = refs[i]

    d = pl.program_id(1)
    M = d_t * H * W
    d0 = pl.multiple_of(d * d_t, d_t)
    # Depth window feeding output depths [d*d_t, d*d_t + d_t): padded slab.
    xs = x_ref[pl.ds(d0, d_t + 2), :, :, :]            # (d_t+2, H+2, W+2, Cpad)

    if fuse_in_affine:
        # BatchNorm affine + ReLU fused on the conv *input*; the conv's
        # zero-padding halo must stay exactly zero, so mask it back.
        xf = jnp.maximum(
            xs.astype(jnp.float32) * sc_ref[...] + sh_ref[...], 0.0)
        shp = xf.shape
        di = lax.broadcasted_iota(jnp.int32, shp, 0) + d0
        hi = lax.broadcasted_iota(jnp.int32, shp, 1)
        wi = lax.broadcasted_iota(jnp.int32, shp, 2)
        interior = ((di >= 1) & (di <= Dout) & (hi >= 1) & (hi <= H)
                    & (wi >= 1) & (wi <= W))
        xs = jnp.where(interior, xf, 0.0).astype(jnp.bfloat16)

    # im2col patch: every tap slot is Cpad (= k*128) lanes wide, so each of
    # the 27 writes is a full-width, 128-aligned, unmasked store.
    for kd in range(3):
        for kh in range(3):
            for kw in range(3):
                tap = (kd * 3 + kh) * 3 + kw
                sl = xs[kd:kd + d_t, kh:kh + H, kw:kw + W, :]   # (d_t,H,W,Cpad)
                patch_ref[:, tap * Cpad:(tap + 1) * Cpad] = sl.reshape(M, Cpad)

    # One lane-dense MXU matmul, bf16 operands, f32 accumulation.
    acc = jnp.dot(patch_ref[...], w_ref[...],
                  preferred_element_type=jnp.float32)           # (M, co_pad)
    acc = acc + b_ref[...]
    o_ref[...] = acc.astype(o_ref.dtype)

    if compute_stats:
        # BN partials accumulated in the resident output block across the
        # "arbitrary" depth axis; written back once per batch element.
        @pl.when(d == 0)
        def _():
            sum_ref[...] = jnp.zeros_like(sum_ref)
            sq_ref[...] = jnp.zeros_like(sq_ref)
        sum_ref[...] += jnp.sum(acc, axis=0, keepdims=True)
        sq_ref[...] += jnp.sum(acc * acc, axis=0, keepdims=True)


def conv3d_im2col(x, w_mat, bias, *, in_scale=None, in_shift=None,
                  compute_stats=True, out_dtype=jnp.bfloat16, m_target=512):
    """3x3x3, stride-1, pad-1 Conv3d (== the module's stride-1 ConvTranspose3d
    with flipped / channel-swapped weights).

    x:     (N, D, H, W, C) bf16 activations.
    w_mat: (27*Cpad, co_pad) bf16 im2col weights (channel dims padded to 128).
    bias:  (co_pad,) f32.
    Returns y (N, D, H, W, co_pad) [+ f32 BN partial sums if compute_stats].
    """
    N, D, H, W, C = x.shape
    Cpad = w_mat.shape[0] // 27
    co_pad = w_mat.shape[1]
    assert Cpad % _LANE == 0 and co_pad % _LANE == 0 and Cpad >= C
    fuse = in_scale is not None

    d_t = _pick_dt(D, H, W, m_target)
    M = d_t * H * W

    # TODO(synk): this pad is one extra HBM copy (halo + first-layer lane pad);
    # an overlapping / manually DMA'd depth window would remove it and bound
    # the per-batch VMEM residency on v7x.
    xp = jnp.pad(x.astype(jnp.bfloat16),
                 ((0, 0), (1, 1), (1, 1), (1, 1), (0, Cpad - C)))

    inputs = [xp, w_mat.astype(jnp.bfloat16),
              bias.reshape(1, co_pad).astype(jnp.float32)]
    in_specs = [
        pl.BlockSpec((None, D + 2, H + 2, W + 2, Cpad),
                     lambda n, d: (n, 0, 0, 0, 0)),
        pl.BlockSpec((27 * Cpad, co_pad), lambda n, d: (0, 0)),
        pl.BlockSpec((1, co_pad), lambda n, d: (0, 0)),
    ]
    if fuse:
        inputs += [in_scale.reshape(1, Cpad).astype(jnp.float32),
                   in_shift.reshape(1, Cpad).astype(jnp.float32)]
        in_specs += [pl.BlockSpec((1, Cpad), lambda n, d: (0, 0)),
                     pl.BlockSpec((1, Cpad), lambda n, d: (0, 0))]

    o_shape = jax.ShapeDtypeStruct((N, D // d_t, M, co_pad), out_dtype)
    o_spec = pl.BlockSpec((None, None, M, co_pad), lambda n, d: (n, d, 0, 0))
    if compute_stats:
        stat_shape = jax.ShapeDtypeStruct((N, 1, co_pad), jnp.float32)
        stat_spec = pl.BlockSpec((None, 1, co_pad), lambda n, d: (n, 0, 0))
        out_shape = (o_shape, stat_shape, stat_shape)
        out_specs = (o_spec, stat_spec, stat_spec)
    else:
        out_shape = o_shape
        out_specs = o_spec

    kernel = functools.partial(
        _conv3d_im2col_kernel, H=H, W=W, Cpad=Cpad, Dout=D, d_t=d_t,
        fuse_in_affine=fuse, compute_stats=compute_stats)

    res = pl.pallas_call(
        kernel,
        grid=(N, D // d_t),
        in_specs=in_specs,
        out_specs=out_specs,
        out_shape=out_shape,
        scratch_shapes=[pltpu.VMEM((M, 27 * Cpad), jnp.bfloat16)],
        compiler_params=pltpu.CompilerParams(
            dimension_semantics=("parallel", "arbitrary"),
            vmem_limit_bytes=_vmem_limit()),
    )(*inputs)

    if compute_stats:
        y, s, q = res
    else:
        y, s, q = res, None, None
    y = y.reshape(N, D, H, W, co_pad)
    return (y, s, q) if compute_stats else y


def bn_scale_shift(sum_p, sq_p, gamma, beta, count):
    """Training-mode BatchNorm (biased variance) folded to a per-channel affine."""
    s = jnp.sum(sum_p, axis=(0, 1))                     # (co_pad,)
    q = jnp.sum(sq_p, axis=(0, 1))
    mean = s / count
    var = jnp.maximum(q / count - mean * mean, 0.0)     # biased variance
    inv = lax.rsqrt(var + EPS)
    scale = gamma * inv
    shift = beta - mean * scale
    return scale, shift


# ----------------------------------------------------------------------------
# Fused (BN1-affine + ReLU) + trilinear (1,2,2) upsample, align_corners=True.
# Depth scale is 1 => per-depth bilinear; H & W interpolation folded into one
# kron(Ah, Aw) matrix -> a single lane-dense matmul, no minor-dim transposes.
# ----------------------------------------------------------------------------
def _upsample_affine_relu_kernel(x_ref, a_ref, sc_ref, sh_ref, o_ref):
    # x: (H*W, C) bf16; a: (Ho*Wo, H*W) bf16; sc/sh: (1, C) f32; o: (Ho*Wo, C)
    xf = jnp.maximum(
        x_ref[...].astype(jnp.float32) * sc_ref[...] + sh_ref[...], 0.0)
    u = jnp.dot(a_ref[...], xf.astype(jnp.bfloat16),
                preferred_element_type=jnp.float32)
    o_ref[...] = u.astype(o_ref.dtype)


def _linear_interp_matrix(in_size, out_size):
    """PyTorch align_corners=True linear interpolation as an (out, in) matrix."""
    A = np.zeros((out_size, in_size), np.float32)
    if out_size == 1 or in_size == 1:
        A[:, 0] = 1.0
        return A
    src = np.arange(out_size) * (in_size - 1) / (out_size - 1)
    i0 = np.clip(np.floor(src).astype(np.int64), 0, in_size - 2)
    frac = (src - i0).astype(np.float32)
    A[np.arange(out_size), i0] = 1.0 - frac
    A[np.arange(out_size), i0 + 1] = frac
    return A


def upsample_1x2x2_affine_relu(y, scale, shift):
    N, D, H, W, C = y.shape
    Ho, Wo = 2 * H, 2 * W
    A = np.kron(_linear_interp_matrix(H, Ho), _linear_interp_matrix(W, Wo))
    A = jnp.asarray(A, jnp.bfloat16)                    # (Ho*Wo, H*W)
    out = pl.pallas_call(
        _upsample_affine_relu_kernel,
        grid=(N, D),
        in_specs=[
            pl.BlockSpec((None, None, H * W, C), lambda n, d: (n, d, 0, 0)),
            pl.BlockSpec((Ho * Wo, H * W), lambda n, d: (0, 0)),
            pl.BlockSpec((1, C), lambda n, d: (0, 0)),
            pl.BlockSpec((1, C), lambda n, d: (0, 0)),
        ],
        out_specs=pl.BlockSpec((None, None, Ho * Wo, C),
                               lambda n, d: (n, d, 0, 0)),
        out_shape=jax.ShapeDtypeStruct((N, D, Ho * Wo, C), jnp.bfloat16),
        compiler_params=pltpu.CompilerParams(
            dimension_semantics=("parallel", "arbitrary"),
            vmem_limit_bytes=_vmem_limit()),
    )(y.reshape(N, D, H * W, C), A,
      scale.reshape(1, C).astype(jnp.float32),
      shift.reshape(1, C).astype(jnp.float32))
    return out.reshape(N, D, Ho, Wo, C)


# ----------------------------------------------------------------------------
# Weight re-layout helpers (wrapper glue, constant-foldable under jit).
# ----------------------------------------------------------------------------
def convtranspose_weight_to_mat(w_t, cin_pad, cout_pad):
    """(Cin, Cout, 3,3,3) ConvTranspose3d weight -> padded bf16 im2col matrix.
    stride-1 / pad-1 / output_padding-0 transposed conv == regular conv with a
    spatially flipped, channel-swapped kernel."""
    cin, cout = w_t.shape[0], w_t.shape[1]
    w = jnp.transpose(jnp.flip(w_t, axis=(2, 3, 4)), (2, 3, 4, 0, 1))
    w = jnp.pad(w, ((0, 0),) * 3 + ((0, cin_pad - cin), (0, cout_pad - cout)))
    return w.reshape(27 * cin_pad, cout_pad).astype(jnp.bfloat16)


def conv_weight_to_mat(w_c, cin_pad, cout_pad):
    """(Cout, Cin, 3,3,3) Conv3d weight -> padded bf16 im2col matrix."""
    cout, cin = w_c.shape[0], w_c.shape[1]
    w = jnp.transpose(w_c, (2, 3, 4, 1, 0))
    w = jnp.pad(w, ((0, 0),) * 3 + ((0, cin_pad - cin), (0, cout_pad - cout)))
    return w.reshape(27 * cin_pad, cout_pad).astype(jnp.bfloat16)


def _pad_vec(v, n):
    return jnp.pad(v, (0, n - v.shape[0])).astype(jnp.float32)


# ----------------------------------------------------------------------------
# Decoder wrapper + deterministic parameter init
# ----------------------------------------------------------------------------
def init_params(key, output_channels, base_channels, latent_channels):
    def convt_block(k, cin, cout):          # ConvTranspose3d + BN params
        k1, k2 = jax.random.split(k)
        bound = 1.0 / (cin * 27) ** 0.5
        w = jax.random.uniform(k1, (cin, cout, 3, 3, 3), jnp.float32, -bound, bound)
        b = jax.random.uniform(k2, (cout,), jnp.float32, -bound, bound)
        return (w, b, jnp.ones((cout,), jnp.float32), jnp.zeros((cout,), jnp.float32))

    def conv_layer(k, cin, cout):           # plain Conv3d params
        k1, k2 = jax.random.split(k)
        bound = 1.0 / (cin * 27) ** 0.5
        w = jax.random.uniform(k1, (cout, cin, 3, 3, 3), jnp.float32, -bound, bound)
        b = jax.random.uniform(k2, (cout,), jnp.float32, -bound, bound)
        return (w, b)

    k1, k2, k3 = jax.random.split(key, 3)
    return {
        "convt1": convt_block(k1, latent_channels, base_channels * 2),
        "convt2": convt_block(k2, base_channels * 2, base_channels),
        "conv_out": conv_layer(k3, base_channels, output_channels),
    }


def proxy_network_decoder(x_ncdhw, params):
    """x: (N, latent, D, H, W) -> (N, output_channels, D, 2H, 2W), like PyTorch."""
    x = jnp.transpose(x_ncdhw, (0, 2, 3, 4, 1)).astype(jnp.bfloat16)  # NDHWC
    N, D, H, W, c_in = x.shape

    # conv_transpose1 + BN1 (training-mode batch stats, fused into the conv pass)
    w1, b1, g1, be1 = params["convt1"]
    c1 = w1.shape[1]
    cin_p, c1p = _round_up(c_in, _LANE), _round_up(c1, _LANE)
    y1, s1, q1 = conv3d_im2col(
        x, convtranspose_weight_to_mat(w1, cin_p, c1p), _pad_vec(b1, c1p))
    sc1, sh1 = bn_scale_shift(s1, q1, _pad_vec(g1, c1p), _pad_vec(be1, c1p),
                              count=N * D * H * W)

    # Upsample(scale=(1,2,2), trilinear, align_corners=True) with BN1+ReLU fused.
    y1u = upsample_1x2x2_affine_relu(y1, sc1, sh1)
    Hu, Wu = 2 * H, 2 * W

    # conv_transpose2 + BN2 batch stats (output lane-padded to 128 channels).
    w2, b2, g2, be2 = params["convt2"]
    c2 = w2.shape[1]
    c2p = _round_up(c2, _LANE)
    y2, s2, q2 = conv3d_im2col(
        y1u, convtranspose_weight_to_mat(w2, c1p, c2p), _pad_vec(b2, c2p))
    sc2, sh2 = bn_scale_shift(s2, q2, _pad_vec(g2, c2p), _pad_vec(be2, c2p),
                              count=N * D * Hu * Wu)

    # conv_output: BN2-affine + ReLU fused into the im2col prologue, no BN
    # stats, f32 output (module output).
    w3, b3 = params["conv_out"]
    c3 = w3.shape[0]
    c3p = _round_up(c3, _LANE)
    y3 = conv3d_im2col(
        y2, conv_weight_to_mat(w3, c2p, c3p), _pad_vec(b3, c3p),
        in_scale=sc2, in_shift=sh2, compute_stats=False,
        out_dtype=jnp.float32)
    y3 = y3[..., :c3]                                   # drop lane padding

    return jnp.transpose(y3, (0, 4, 1, 2, 3))           # NDHWC -> NCDHW


if __name__ == "__main__":
    key = jax.random.PRNGKey(0)
    # Module's default channel counts (lane-friendly 32/64/128), small spatial dims.
    output_channels, base_channels, latent_channels = 128, 64, 32
    N, D, H, W = 2, 2, 4, 4

    kx, kp = jax.random.split(key)
    x = jax.random.normal(kx, (N, latent_channels, D, H, W), jnp.float32)
    params = init_params(kp, output_channels, base_channels, latent_channels)

    out = proxy_network_decoder(x, params)
    out = jax.block_until_ready(out)
    assert out.shape == (N, output_channels, D, 2 * H, 2 * W), out.shape
    assert bool(jnp.all(jnp.isfinite(out)))
    print("KERNEL_OK")
</pallas_src>

<mosaic_0001>
module attributes {stable_mosaic.version = 11 : i64} {
  func.func @_conv3d_im2col_kernel(%arg0: i32, %arg1: i32, %arg2: memref<1x4x6x6x128xbf16, #tpu.memory_space<vmem>>, %arg3: memref<3456x128xbf16, #tpu.memory_space<vmem>>, %arg4: memref<1x128xf32, #tpu.memory_space<vmem>>, %arg5: memref<1x1x32x128xbf16, #tpu.memory_space<vmem>>, %arg6: memref<1x1x128xf32, #tpu.memory_space<vmem>>, %arg7: memref<1x1x128xf32, #tpu.memory_space<vmem>>, %arg8: memref<32x3456xbf16, #tpu.memory_space<vmem>>) attributes {dimension_semantics = [#tpu.dimension_semantics<parallel>, #tpu.dimension_semantics<arbitrary>], iteration_bounds = array<i64: 2, 1>, scalar_prefetch = 0 : i64, scratch_operands = 1 : i64, tpu.core_type = #tpu.core_type<tc>, window_params = [{transform_indices = @transform_0, window_bounds = array<i64: 1, 4, 6, 6, 128>}, {pipeline_mode = #tpu.pipeline_mode<synchronous>, transform_indices = @transform_1, window_bounds = array<i64: 3456, 128>}, {pipeline_mode = #tpu.pipeline_mode<synchronous>, transform_indices = @transform_2, window_bounds = array<i64: 1, 128>}, {transform_indices = @transform_3, window_bounds = array<i64: 1, 1, 32, 128>}, {transform_indices = @transform_4, window_bounds = array<i64: 1, 1, 128>}, {transform_indices = @transform_5, window_bounds = array<i64: 1, 1, 128>}]} {
    %c2_i32 = arith.constant 2 : i32
    %0 = arith.muli %arg1, %c2_i32 : i32
    %1 = tpu.assume_multiple %0, 2 : i32
    %c0 = arith.constant 0 : index
    %2 = arith.index_cast %1 : i32 to index
    %c0_0 = arith.constant 0 : index
    %c0_1 = arith.constant 0 : index
    %c0_2 = arith.constant 0 : index
    %3 = vector.load %arg2[%c0, %2, %c0_0, %c0_1, %c0_2] : memref<1x4x6x6x128xbf16, #tpu.memory_space<vmem>>, vector<1x4x6x6x128xbf16>
    %4 = vector.shape_cast %3 : vector<1x4x6x6x128xbf16> to vector<4x6x6x128xbf16>
    %5 = vector.extract_strided_slice %4 {offsets = [0, 0, 0, 0], sizes = [2, 4, 4, 128], strides = [1, 1, 1, 1]} : vector<4x6x6x128xbf16> to vector<2x4x4x128xbf16>
    %6 = vector.shape_cast %5 : vector<2x4x4x128xbf16> to vector<32x128xbf16>
    %c0_3 = arith.constant 0 : index
    %c0_4 = arith.constant 0 : index
    %7 = vector.load %arg8[%c0_3, %c0_4] : memref<32x3456xbf16, #tpu.memory_space<vmem>>, vector<32x128xbf16>
    tpu.vector_store %arg8[%c0_3, %c0_4], %6 {strides = array<i32>} : memref<32x3456xbf16, #tpu.memory_space<vmem>>, vector<32x128xbf16>,
    %8 = vector.extract_strided_slice %4 {offsets = [0, 0, 1, 0], sizes = [2, 4, 4, 128], strides = [1, 1, 1, 1]} : vector<4x6x6x128xbf16> to vector<2x4x4x128xbf16>
    %9 = vector.shape_cast %8 : vector<2x4x4x128xbf16> to vector<32x128xbf16>
    %c0_5 = arith.constant 0 : index
    %c128 = arith.constant 128 : index
    %10 = vector.load %arg8[%c0_5, %c128] : memref<32x3456xbf16, #tpu.memory_space<vmem>>, vector<32x128xbf16>
    tpu.vector_store %arg8[%c0_5, %c128], %9 {strides = array<i32>} : memref<32x3456xbf16, #tpu.memory_space<vmem>>, vector<32x128xbf16>,
    %11 = vector.extract_strided_slice %4 {offsets = [0, 0, 2, 0], sizes = [2, 4, 4, 128], strides = [1, 1, 1, 1]} : vector<4x6x6x128xbf16> to vector<2x4x4x128xbf16>
    %12 = vector.shape_cast %11 : vector<2x4x4x128xbf16> to vector<32x128xbf16>
    %c0_6 = arith.constant 0 : index
    %c256 = arith.constant 256 : index
    %13 = vector.load %arg8[%c0_6, %c256] : memref<32x3456xbf16, #tpu.memory_space<vmem>>, vector<32x128xbf16>
    tpu.vector_store %arg8[%c0_6, %c256], %12 {strides = array<i32>} : memref<32x3456xbf16, #tpu.memory_space<vmem>>, vector<32x128xbf16>,
    %14 = vector.extract_strided_slice %4 {offsets = [0, 1, 0, 0], sizes = [2, 4, 4, 128], strides = [1, 1, 1, 1]} : vector<4x6x6x128xbf16> to vector<2x4x4x128xbf16>
    %15 = vector.shape_cast %14 : vector<2x4x4x128xbf16> to vector<32x128xbf16>
    %c0_7 = arith.constant 0 : index
    %c384 = arith.constant 384 : index
    %16 = vector.load %arg8[%c0_7, %c384] : memref<32x3456xbf16, #tpu.memory_space<vmem>>, vector<32x128xbf16>
    tpu.vector_store %arg8[%c0_7, %c384], %15 {strides = array<i32>} : memref<32x3456xbf16, #tpu.memory_space<vmem>>, vector<32x128xbf16>,
    %17 = vector.extract_strided_slice %4 {offsets = [0, 1, 1, 0], sizes = [2, 4, 4, 128], strides = [1, 1, 1, 1]} : vector<4x6x6x128xbf16> to vector<2x4x4x128xbf16>
    %18 = vector.shape_cast %17 : vector<2x4x4x128xbf16> to vector<32x128xbf16>
    %c0_8 = arith.constant 0 : index
    %c512 = arith.constant 512 : index
    %19 = vector.load %arg8[%c0_8, %c512] : memref<32x3456xbf16, #tpu.memory_space<vmem>>, vector<32x128xbf16>
    tpu.vector_store %arg8[%c0_8, %c512], %18 {strides = array<i32>} : memref<32x3456xbf16, #tpu.memory_space<vmem>>, vector<32x128xbf16>,
    %20 = vector.extract_strided_slice %4 {offsets = [0, 1, 2, 0], sizes = [2, 4, 4, 128], strides = [1, 1, 1, 1]} : vector<4x6x6x128xbf16> to vector<2x4x4x128xbf16>
    %21 = vector.shape_cast %20 : vector<2x4x4x128xbf16> to vector<32x128xbf16>
    %c0_9 = arith.constant 0 : index
    %c640 = arith.constant 640 : index
    %22 = vector.load %arg8[%c0_9, %c640] : memref<32x3456xbf16, #tpu.memory_space<vmem>>, vector<32x128xbf16>
    tpu.vector_store %arg8[%c0_9, %c640], %21 {strides = array<i32>} : memref<32x3456xbf16, #tpu.memory_space<vmem>>, vector<32x128xbf16>,
    %23 = vector.extract_strided_slice %4 {offsets = [0, 2, 0, 0], sizes = [2, 4, 4, 128], strides = [1, 1, 1, 1]} : vector<4x6x6x128xbf16> to vector<2x4x4x128xbf16>
    %24 = vector.shape_cast %23 : vector<2x4x4x128xbf16> to vector<32x128xbf16>
    %c0_10 = arith.constant 0 : index
    %c768 = arith.constant 768 : index
    %25 = vector.load %arg8[%c0_10, %c768] : memref<32x3456xbf16, #tpu.memory_space<vmem>>, vector<32x128xbf16>
    tpu.vector_store %arg8[%c0_10, %c768], %24 {strides = array<i32>} : memref<32x3456xbf16, #tpu.memory_space<vmem>>, vector<32x128xbf16>,
    %26 = vector.extract_strided_slice %4 {offsets = [0, 2, 1, 0], sizes = [2, 4, 4, 128], strides = [1, 1, 1, 1]} : vector<4x6x6x128xbf16> to vector<2x4x4x128xbf16>
    %27 = vector.shape_cast %26 : vector<2x4x4x128xbf16> to vector<32x128xbf16>
    %c0_11 = arith.constant 0 : index
    %c896 = arith.constant 896 : index
    %28 = vector.load %arg8[%c0_11, %c896] : memref<32x3456xbf16, #tpu.memory_space<vmem>>, vector<32x128xbf16>
    tpu.vector_store %arg8[%c0_11, %c896], %27 {strides = array<i32>} : memref<32x3456xbf16, #tpu.memory_space<vmem>>, vector<32x128xbf16>,
    %29 = vector.extract_strided_slice %4 {offsets = [0, 2, 2, 0], sizes = [2, 4, 4, 128], strides = [1, 1, 1, 1]} : vector<4x6x6x128xbf16> to vector<2x4x4x128xbf16>
    %30 = vector.shape_cast %29 : vector<2x4x4x128xbf16> to vector<32x128xbf16>
    %c0_12 = arith.constant 0 : index
    %c1024 = arith.constant 1024 : index
    %31 = vector.load %arg8[%c0_12, %c1024] : memref<32x3456xbf16, #tpu.memory_space<vmem>>, vector<32x128xbf16>
    tpu.vector_store %arg8[%c0_12, %c1024], %30 {strides = array<i32>} : memref<32x3456xbf16, #tpu.memory_space<vmem>>, vector<32x128xbf16>,
    %32 = vector.extract_strided_slice %4 {offsets = [1, 0, 0, 0], sizes = [2, 4, 4, 128], strides = [1, 1, 1, 1]} : vector<4x6x6x128xbf16> to vector<2x4x4x128xbf16>
    %33 = vector.shape_cast %32 : vector<2x4x4x128xbf16> to vector<32x128xbf16>
    %c0_13 = arith.constant 0 : index
    %c1152 = arith.constant 1152 : index
    %34 = vector.load %arg8[%c0_13, %c1152] : memref<32x3456xbf16, #tpu.memory_space<vmem>>, vector<32x128xbf16>
    tpu.vector_store %arg8[%c0_13, %c1152], %33 {strides = array<i32>} : memref<32x3456xbf16, #tpu.memory_space<vmem>>, vector<32x128xbf16>,
    %35 = vector.extract_strided_slice %4 {offsets = [1, 0, 1, 0], sizes = [2, 4, 4, 128], strides = [1, 1, 1, 1]} : vector<4x6x6x128xbf16> to vector<2x4x4x128xbf16>
    %36 = vector.shape_cast %35 : vector<2x4x4x128xbf16> to vector<32x128xbf16>
    %c0_14 = arith.constant 0 : index
    %c1280 = arith.constant 1280 : index
    %37 = vector.load %arg8[%c0_14, %c1280] : memref<32x3456xbf16, #tpu.memory_space<vmem>>, vector<32x128xbf16>
    tpu.vector_store %arg8[%c0_14, %c1280], %36 {strides = array<i32>} : memref<32x3456xbf16, #tpu.memory_space<vmem>>, vector<32x128xbf16>,
    %38 = vector.extract_strided_slice %4 {offsets = [1, 0, 2, 0], sizes = [2, 4, 4, 128], strides = [1, 1, 1, 1]} : vector<4x6x6x128xbf16> to vector<2x4x4x128xbf16>
    %39 = vector.shape_cast %38 : vector<2x4x4x128xbf16> to vector<32x128xbf16>
    %c0_15 = arith.constant 0 : index
    %c1408 = arith.constant 1408 : index
    %40 = vector.load %arg8[%c0_15, %c1408] : memref<32x3456xbf16, #tpu.memory_space<vmem>>, vector<32x128xbf16>
    tpu.vector_store %arg8[%c0_15, %c1408], %39 {strides = array<i32>} : memref<32x3456xbf16, #tpu.memory_space<vmem>>, vector<32x128xbf16>,
    %41 = vector.extract_strided_slice %4 {offsets = [1, 1, 0, 0], sizes = [2, 4, 4, 128], strides = [1, 1, 1, 1]} : vector<4x6x6x128xbf16> to vector<2x4x4x128xbf16>
    %42 = vector.shape_cast %41 : vector<2x4x4x128xbf16> to vector<32x128xbf16>
    %c0_16 = arith.constant 0 : index
    %c1536 = arith.constant 1536 : index
    %43 = vector.load %arg8[%c0_16, %c1536] : memref<32x3456xbf16, #tpu.memory_space<vmem>>, vector<32x128xbf16>
    tpu.vector_store %arg8[%c0_16, %c1536], %42 {strides = array<i32>} : memref<32x3456xbf16, #tpu.memory_space<vmem>>, vector<32x128xbf16>,
    %44 = vector.extract_strided_slice %4 {offsets = [1, 1, 1, 0], sizes = [2, 4, 4, 128], strides = [1, 1, 1, 1]} : vector<4x6x6x128xbf16> to vector<2x4x4x128xbf16>
    %45 = vector.shape_cast %44 : vector<2x4x4x128xbf16> to vector<32x128xbf16>
    %c0_17 = arith.constant 0 : index
    %c1664 = arith.constant 1664 : index
    %46 = vector.load %arg8[%c0_17, %c1664] : memref<32x3456xbf16, #tpu.memory_space<vmem>>, vector<32x128xbf16>
    tpu.vector_store %arg8[%c0_17, %c1664], %45 {strides = array<i32>} : memref<32x3456xbf16, #tpu.memory_space<vmem>>, vector<32x128xbf16>,
    %47 = vector.extract_strided_slice %4 {offsets = [1, 1, 2, 0], sizes = [2, 4, 4, 128], strides = [1, 1, 1, 1]} : vector<4x6x6x128xbf16> to vector<2x4x4x128xbf16>
    %48 = vector.shape_cast %47 : vector<2x4x4x128xbf16> to vector<32x128xbf16>
    %c0_18 = arith.constant 0 : index
    %c1792 = arith.constant 1792 : index
    %49 = vector.load %arg8[%c0_18, %c1792] : memref<32x3456xbf16, #tpu.memory_space<vmem>>, vector<32x128xbf16>
    tpu.vector_store %arg8[%c0_18, %c1792], %48 {strides = array<i32>} : memref<32x3456xbf16, #tpu.memory_space<vmem>>, vector<32x128xbf16>,
    %50 = vector.extract_strided_slice %4 {offsets = [1, 2, 0, 0], sizes = [2, 4, 4, 128], strides = [1, 1, 1, 1]} : vector<4x6x6x128xbf16> to vector<2x4x4x128xbf16>
    %51 = vector.shape_cast %50 : vector<2x4x4x128xbf16> to vector<32x128xbf16>
    %c0_19 = arith.constant 0 : index
    %c1920 = arith.constant 1920 : index
    %52 = vector.load %arg8[%c0_19, %c1920] : memref<32x3456xbf16, #tpu.memory_space<vmem>>, vector<32x128xbf16>
    tpu.vector_store %arg8[%c0_19, %c1920], %51 {strides = array<i32>} : memref<32x3456xbf16, #tpu.memory_space<vmem>>, vector<32x128xbf16>,
    %53 = vector.extract_strided_slice %4 {offsets = [1, 2, 1, 0], sizes = [2, 4, 4, 128], strides = [1, 1, 1, 1]} : vector<4x6x6x128xbf16> to vector<2x4x4x128xbf16>
    %54 = vector.shape_cast %53 : vector<2x4x4x128xbf16> to vector<32x128xbf16>
    %c0_20 = arith.constant 0 : index
    %c2048 = arith.constant 2048 : index
    %55 = vector.load %arg8[%c0_20, %c2048] : memref<32x3456xbf16, #tpu.memory_space<vmem>>, vector<32x128xbf16>
    tpu.vector_store %arg8[%c0_20, %c2048], %54 {strides = array<i32>} : memref<32x3456xbf16, #tpu.memory_space<vmem>>, vector<32x128xbf16>,
    %56 = vector.extract_strided_slice %4 {offsets = [1, 2, 2, 0], sizes = [2, 4, 4, 128], strides = [1, 1, 1, 1]} : vector<4x6x6x128xbf16> to vector<2x4x4x128xbf16>
    %57 = vector.shape_cast %56 : vector<2x4x4x128xbf16> to vector<32x128xbf16>
    %c0_21 = arith.constant 0 : index
    %c2176 = arith.constant 2176 : index
    %58 = vector.load %arg8[%c0_21, %c2176] : memref<32x3456xbf16, #tpu.memory_space<vmem>>, vector<32x128xbf16>
    tpu.vector_store %arg8[%c0_21, %c2176], %57 {strides = array<i32>} : memref<32x3456xbf16, #tpu.memory_space<vmem>>, vector<32x128xbf16>,
    %59 = vector.extract_strided_slice %4 {offsets = [2, 0, 0, 0], sizes = [2, 4, 4, 128], strides = [1, 1, 1, 1]} : vector<4x6x6x128xbf16> to vector<2x4x4x128xbf16>
    %60 = vector.shape_cast %59 : vector<2x4x4x128xbf16> to vector<32x128xbf16>
    %c0_22 = arith.constant 0 : index
    %c2304 = arith.constant 2304 : index
    %61 = vector.load %arg8[%c0_22, %c2304] : memref<32x3456xbf16, #tpu.memory_space<vmem>>, vector<32x128xbf16>
    tpu.vector_store %arg8[%c0_22, %c2304], %60 {strides = array<i32>} : memref<32x3456xbf16, #tpu.memory_space<vmem>>, vector<32x128xbf16>,
    %62 = vector.extract_strided_slice %4 {offsets = [2, 0, 1, 0], sizes = [2, 4, 4, 128], strides = [1, 1, 1, 1]} : vector<4x6x6x128xbf16> to vector<2x4x4x128xbf16>
    %63 = vector.shape_cast %62 : vector<2x4x4x128xbf16> to vector<32x128xbf16>
    %c0_23 = arith.constant 0 : index
    %c2432 = arith.constant 2432 : index
    %64 = vector.load %arg8[%c0_23, %c2432] : memref<32x3456xbf16, #tpu.memory_space<vmem>>, vector<32x128xbf16>
    tpu.vector_store %arg8[%c0_23, %c2432], %63 {strides = array<i32>} : memref<32x3456xbf16, #tpu.memory_space<vmem>>, vector<32x128xbf16>,
    %65 = vector.extract_strided_slice %4 {offsets = [2, 0, 2, 0], sizes = [2, 4, 4, 128], strides = [1, 1, 1, 1]} : vector<4x6x6x128xbf16> to vector<2x4x4x128xbf16>
    %66 = vector.shape_cast %65 : vector<2x4x4x128xbf16> to vector<32x128xbf16>
    %c0_24 = arith.constant 0 : index
    %c2560 = arith.constant 2560 : index
    %67 = vector.load %arg8[%c0_24, %c2560] : memref<32x3456xbf16, #tpu.memory_space<vmem>>, vector<32x128xbf16>
    tpu.vector_store %arg8[%c0_24, %c2560], %66 {strides = array<i32>} : memref<32x3456xbf16, #tpu.memory_space<vmem>>, vector<32x128xbf16>,
    %68 = vector.extract_strided_slice %4 {offsets = [2, 1, 0, 0], sizes = [2, 4, 4, 128], strides = [1, 1, 1, 1]} : vector<4x6x6x128xbf16> to vector<2x4x4x128xbf16>
    %69 = vector.shape_cast %68 : vector<2x4x4x128xbf16> to vector<32x128xbf16>
    %c0_25 = arith.constant 0 : index
    %c2688 = arith.constant 2688 : index
    %70 = vector.load %arg8[%c0_25, %c2688] : memref<32x3456xbf16, #tpu.memory_space<vmem>>, vector<32x128xbf16>
    tpu.vector_store %arg8[%c0_25, %c2688], %69 {strides = array<i32>} : memref<32x3456xbf16, #tpu.memory_space<vmem>>, vector<32x128xbf16>,
    %71 = vector.extract_strided_slice %4 {offsets = [2, 1, 1, 0], sizes = [2, 4, 4, 128], strides = [1, 1, 1, 1]} : vector<4x6x6x128xbf16> to vector<2x4x4x128xbf16>
    %72 = vector.shape_cast %71 : vector<2x4x4x128xbf16> to vector<32x128xbf16>
    %c0_26 = arith.constant 0 : index
    %c2816 = arith.constant 2816 : index
    %73 = vector.load %arg8[%c0_26, %c2816] : memref<32x3456xbf16, #tpu.memory_space<vmem>>, vector<32x128xbf16>
    tpu.vector_store %arg8[%c0_26, %c2816], %72 {strides = array<i32>} : memref<32x3456xbf16, #tpu.memory_space<vmem>>, vector<32x128xbf16>,
    %74 = vector.extract_strided_slice %4 {offsets = [2, 1, 2, 0], sizes = [2, 4, 4, 128], strides = [1, 1, 1, 1]} : vector<4x6x6x128xbf16> to vector<2x4x4x128xbf16>
    %75 = vector.shape_cast %74 : vector<2x4x4x128xbf16> to vector<32x128xbf16>
    %c0_27 = arith.constant 0 : index
    %c2944 = arith.constant 2944 : index
    %76 = vector.load %arg8[%c0_27, %c2944] : memref<32x3456xbf16, #tpu.memory_space<vmem>>, vector<32x128xbf16>
    tpu.vector_store %arg8[%c0_27, %c2944], %75 {strides = array<i32>} : memref<32x3456xbf16, #tpu.memory_space<vmem>>, vector<32x128xbf16>,
    %77 = vector.extract_strided_slice %4 {offsets = [2, 2, 0, 0], sizes = [2, 4, 4, 128], strides = [1, 1, 1, 1]} : vector<4x6x6x128xbf16> to vector<2x4x4x128xbf16>
    %78 = vector.shape_cast %77 : vector<2x4x4x128xbf16> to vector<32x128xbf16>
    %c0_28 = arith.constant 0 : index
    %c3072 = arith.constant 3072 : index
    %79 = vector.load %arg8[%c0_28, %c3072] : memref<32x3456xbf16, #tpu.memory_space<vmem>>, vector<32x128xbf16>
    tpu.vector_store %arg8[%c0_28, %c3072], %78 {strides = array<i32>} : memref<32x3456xbf16, #tpu.memory_space<vmem>>, vector<32x128xbf16>,
    %80 = vector.extract_strided_slice %4 {offsets = [2, 2, 1, 0], sizes = [2, 4, 4, 128], strides = [1, 1, 1, 1]} : vector<4x6x6x128xbf16> to vector<2x4x4x128xbf16>
    %81 = vector.shape_cast %80 : vector<2x4x4x128xbf16> to vector<32x128xbf16>
    %c0_29 = arith.constant 0 : index
    %c3200 = arith.constant 3200 : index
    %82 = vector.load %arg8[%c0_29, %c3200] : memref<32x3456xbf16, #tpu.memory_space<vmem>>, vector<32x128xbf16>
    tpu.vector_store %arg8[%c0_29, %c3200], %81 {strides = array<i32>} : memref<32x3456xbf16, #tpu.memory_space<vmem>>, vector<32x128xbf16>,
    %83 = vector.extract_strided_slice %4 {offsets = [2, 2, 2, 0], sizes = [2, 4, 4, 128], strides = [1, 1, 1, 1]} : vector<4x6x6x128xbf16> to vector<2x4x4x128xbf16>
    %84 = vector.shape_cast %83 : vector<2x4x4x128xbf16> to vector<32x128xbf16>
    %c0_30 = arith.constant 0 : index
    %c3328 = arith.constant 3328 : index
    %85 = vector.load %arg8[%c0_30, %c3328] : memref<32x3456xbf16, #tpu.memory_space<vmem>>, vector<32x128xbf16>
    tpu.vector_store %arg8[%c0_30, %c3328], %84 {strides = array<i32>} : memref<32x3456xbf16, #tpu.memory_space<vmem>>, vector<32x128xbf16>,
    %c0_31 = arith.constant 0 : index
    %c0_32 = arith.constant 0 : index
    %86 = vector.load %arg8[%c0_31, %c0_32] : memref<32x3456xbf16, #tpu.memory_space<vmem>>, vector<32x3456xbf16>
    %c0_33 = arith.constant 0 : index
    %c0_34 = arith.constant 0 : index
    %87 = vector.load %arg3[%c0_33, %c0_34] : memref<3456x128xbf16, #tpu.memory_space<vmem>>, vector<3456x128xbf16>
    %cst = arith.constant dense<0.000000e+00> : vector<32x128xf32>
    %88 = tpu.matmul %86, %87, %cst {dimension_numbers = #tpu.dot_dimension_numbers<[1], [0], [0], [1], [0, 0, 1, 1], [], []>} : vector<32x3456xbf16>, vector<3456x128xbf16>, vector<32x128xf32> -> vector<32x128xf32>
    %c0_35 = arith.constant 0 : index
    %c0_36 = arith.constant 0 : index
    %89 = vector.load %arg4[%c0_35, %c0_36] : memref<1x128xf32, #tpu.memory_space<vmem>>, vector<1x128xf32>
    %90 = vector.broadcast %89 : vector<1x128xf32> to vector<32x128xf32>
    %91 = arith.addf %88, %90 : vector<32x128xf32>
    %92 = arith.truncf %91 : vector<32x128xf32> to vector<32x128xbf16>
    %c0_37 = arith.constant 0 : index
    %c0_38 = arith.constant 0 : index
    %c0_39 = arith.constant 0 : index
    %c0_40 = arith.constant 0 : index
    %93 = vector.load %arg5[%c0_37, %c0_38, %c0_39, %c0_40] : memref<1x1x32x128xbf16, #tpu.memory_space<vmem>>, vector<1x1x32x128xbf16>
    %94 = vector.shape_cast %93 : vector<1x1x32x128xbf16> to vector<32x128xbf16>
    %95 = vector.shape_cast %92 : vector<32x128xbf16> to vector<1x1x32x128xbf16>
    tpu.vector_store %arg5[%c0_37, %c0_38, %c0_39, %c0_40], %95 {strides = array<i32>} : memref<1x1x32x128xbf16, #tpu.memory_space<vmem>>, vector<1x1x32x128xbf16>,
    %c0_i32 = arith.constant 0 : i32
    %96 = arith.cmpi eq, %arg1, %c0_i32 : i32
    %97 = arith.extui %96 : i1 to i32
    %c0_i32_41 = arith.constant 0 : i32
    %98 = arith.cmpi ne, %97, %c0_i32_41 : i32
    scf.if %98 {
      %cst_56 = arith.constant 0.000000e+00 : f32
      %116 = vector.broadcast %cst_56 : f32 to vector<1x128xf32>
      %c0_57 = arith.constant 0 : index
      %c0_58 = arith.constant 0 : index
      %c0_59 = arith.constant 0 : index
      %117 = vector.load %arg6[%c0_57, %c0_58, %c0_59] : memref<1x1x128xf32, #tpu.memory_space<vmem>>, vector<1x1x128xf32>
      %118 = vector.shape_cast %117 : vector<1x1x128xf32> to vector<1x128xf32>
      %119 = vector.shape_cast %116 : vector<1x128xf32> to vector<1x1x128xf32>
      tpu.vector_store %arg6[%c0_57, %c0_58, %c0_59], %119 {strides = array<i32>} : memref<1x1x128xf32, #tpu.memory_space<vmem>>, vector<1x1x128xf32>,
      %cst_60 = arith.constant 0.000000e+00 : f32
      %120 = vector.broadcast %cst_60 : f32 to vector<1x128xf32>
      %c0_61 = arith.constant 0 : index
      %c0_62 = arith.constant 0 : index
      %c0_63 = arith.constant 0 : index
      %121 = vector.load %arg7[%c0_61, %c0_62, %c0_63] : memref<1x1x128xf32, #tpu.memory_space<vmem>>, vector<1x1x128xf32>
      %122 = vector.shape_cast %121 : vector<1x1x128xf32> to vector<1x128xf32>
      %123 = vector.shape_cast %120 : vector<1x128xf32> to vector<1x1x128xf32>
      tpu.vector_store %arg7[%c0_61, %c0_62, %c0_63], %123 {strides = array<i32>} : memref<1x1x128xf32, #tpu.memory_space<vmem>>, vector<1x1x128xf32>,
    } else {
    }
    %c0_42 = arith.constant 0 : index
    %c0_43 = arith.constant 0 : index
    %c0_44 = arith.constant 0 : index
    %99 = vector.load %arg6[%c0_42, %c0_43, %c0_44] : memref<1x1x128xf32, #tpu.memory_space<vmem>>, vector<1x1x128xf32>
    %100 = vector.shape_cast %99 : vector<1x1x128xf32> to vector<1x128xf32>
    %cst_45 = arith.constant dense<0.000000e+00> : vector<128xf32>
    %101 = vector.multi_reduction <add>, %91, %cst_45 [0] : vector<32x128xf32> to vector<128xf32>
    %102 = vector.shape_cast %101 : vector<128xf32> to vector<1x128xf32>
    %103 = arith.addf %100, %102 : vector<1x128xf32>
    %c0_46 = arith.constant 0 : index
    %c0_47 = arith.constant 0 : index
    %c0_48 = arith.constant 0 : index
    %104 = vector.load %arg6[%c0_46, %c0_47, %c0_48] : memref<1x1x128xf32, #tpu.memory_space<vmem>>, vector<1x1x128xf32>
    %105 = vector.shape_cast %104 : vector<1x1x128xf32> to vector<1x128xf32>
    %106 = vector.shape_cast %103 : vector<1x128xf32> to vector<1x1x128xf32>
    tpu.vector_store %arg6[%c0_46, %c0_47, %c0_48], %106 {strides = array<i32>} : memref<1x1x128xf32, #tpu.memory_space<vmem>>, vector<1x1x128xf32>,
    %c0_49 = arith.constant 0 : index
    %c0_50 = arith.constant 0 : index
    %c0_51 = arith.constant 0 : index
    %107 = vector.load %arg7[%c0_49, %c0_50, %c0_51] : memref<1x1x128xf32, #tpu.memory_space<vmem>>, vector<1x1x128xf32>
    %108 = vector.shape_cast %107 : vector<1x1x128xf32> to vector<1x128xf32>
    %109 = arith.mulf %91, %91 : vector<32x128xf32>
    %cst_52 = arith.constant dense<0.000000e+00> : vector<128xf32>
    %110 = vector.multi_reduction <add>, %109, %cst_52 [0] : vector<32x128xf32> to vector<128xf32>
    %111 = vector.shape_cast %110 : vector<128xf32> to vector<1x128xf32>
    %112 = arith.addf %108, %111 : vector<1x128xf32>
    %c0_53 = arith.constant 0 : index
    %c0_54 = arith.constant 0 : index
    %c0_55 = arith.constant 0 : index
    %113 = vector.load %arg7[%c0_53, %c0_54, %c0_55] : memref<1x1x128xf32, #tpu.memory_space<vmem>>, vector<1x1x128xf32>
    %114 = vector.shape_cast %113 : vector<1x1x128xf32> to vector<1x128xf32>
    %115 = vector.shape_cast %112 : vector<1x128xf32> to vector<1x1x128xf32>
    tpu.vector_store %arg7[%c0_53, %c0_54, %c0_55], %115 {strides = array<i32>} : memref<1x1x128xf32, #tpu.memory_space<vmem>>, vector<1x1x128xf32>,
    return
  }
  func.func @transform_0(%arg0: i32, %arg1: i32) -> (i32, i32, i32, i32, i32) {
    %c0_i32 = arith.constant 0 : i32
    %c0_i32_0 = arith.constant 0 : i32
    %c0_i32_1 = arith.constant 0 : i32
    %c0_i32_2 = arith.constant 0 : i32
    %c0_i32_3 = arith.constant 0 : i32
    return %arg0, %c0_i32, %c0_i32_0, %c0_i32_1, %c0_i32_2 : i32, i32, i32, i32, i32
  }
  func.func @transform_1(%arg0: i32, %arg1: i32) -> (i32, i32) {
    %c0_i32 = arith.constant 0 : i32
    %c0_i32_0 = arith.constant 0 : i32
    %c0_i32_1 = arith.constant 0 : i32
    return %c0_i32, %c0_i32_0 : i32, i32
  }
  func.func @transform_2(%arg0: i32, %arg1: i32) -> (i32, i32) {
    %c0_i32 = arith.constant 0 : i32
    %c0_i32_0 = arith.constant 0 : i32
    %c0_i32_1 = arith.constant 0 : i32
    return %c0_i32, %c0_i32_0 : i32, i32
  }
  func.func @transform_3(%arg0: i32, %arg1: i32) -> (i32, i32, i32, i32) {
    %c0_i32 = arith.constant 0 : i32
    %c0_i32_0 = arith.constant 0 : i32
    %c0_i32_1 = arith.constant 0 : i32
    return %arg0, %arg1, %c0_i32, %c0_i32_0 : i32, i32, i32, i32
  }
  func.func @transform_4(%arg0: i32, %arg1: i32) -> (i32, i32, i32) {
    %c0_i32 = arith.constant 0 : i32
    %c0_i32_0 = arith.constant 0 : i32
    %c0_i32_1 = arith.constant 0 : i32
    return %arg0, %c0_i32, %c0_i32_0 : i32, i32, i32
  }
  func.func @transform_5(%arg0: i32, %arg1: i32) -> (i32, i32, i32) {
    %c0_i32 = arith.constant 0 : i32
    %c0_i32_0 = arith.constant 0 : i32
    %c0_i32_1 = arith.constant 0 : i32
    return %arg0, %c0_i32, %c0_i32_0 : i32, i32, i32
  }
}

</mosaic_0001>

<bundles_post_ra>
// kernel: tpu_custom_call.1
= control target key start
LH: loop header
LB: loop body
LE: loop exit
PB: predicated region body
PF: predicated region fallthrough
CT: control target
= control target key end

     0   :  { %11 = vsyncpa [#allocation4], 0  ;;  %s6476_s0 = inlined_call_operand.vmem [shape: bf16[2,4,6,6,128], index: 0, kind: input, shape index: {}]   ;;  %s6477_s1 = inlined_call_operand.hbm [shape: bf16[3456,128], index: 1, kind: input, shape index: {}]   ;;  %s6478_s2 = inlined_call_operand.vmem [shape: f32[1,128], index: 2, kind: input, shape index: {}]   ;;  %s6479_s3 = inlined_call_operand.hbm [shape: bf16[2,1,32,128], index: 3, kind: output, shape index: {0}]   ;;  %s6480_s4 = inlined_call_operand.hbm [shape: f32[2,1,128], index: 4, kind: output, shape index: {1}]   ;;  %s6481_s5 = inlined_call_operand.hbm [shape: f32[2,1,128], index: 5, kind: output, shape index: {2}]  }
   0x1   :  { %12 = vsyncpa [#allocation5], 0 }
   0x2   :  { %14 = vsyncpa [#allocation5 + $0x1], 0 }
   0x3   :  { %15 = vsyncpa [#allocation8], 0 }
   0x4   :  { %17 = vsyncpa [#allocation8 + $0x1], 0  ;;  %s5486_s18 = smov 0   ;;  %s5488_s19 = smov 0  }
   0x5   :  { %s5490_s20 = smov 0   ;;  %s5492_s21 = smov 0  }
   0x6   :  { %s5494_s22 = smov 0   ;;  %s5496_s23 = smov 0  }
   0x7 LB: > { %s5517_s24 = sadd.s32 4294967295, %s5444_s23   ;;  %s6485_s25 = sadd.s32 4294967294, %s5444_s23   ;;  %s5444_s23 = sphi %s5496_s23, %s23_s23   ;;  %s5440_s22 = sphi %s5494_s22, %s6506_s22   ;;  %s5436_s21 = sphi %s5492_s21, %s6505_s21   ;;  %s5432_s20 = sphi %s5490_s20, %s6504_s20   ;;  %s5428_s19 = sphi %s5488_s19, %s6503_s19   ;;  %s5424_s18 = sphi %s5486_s18, %s6502_s18  }
   0x8   : > { %s35_s26 = sadd.s32 1, %s5440_s22  ;;  %s112_s27 = sadd.s32 1, %s5432_s20 }
   0x9   : > { %p37_p0 = scmp.ge.s32.totalorder %s35_s26, 2  ;;  %p122_p1 = scmp.ne.s32.totalorder %s5432_s20, %s5428_s19 }
   0xa   : > { %p123_p2 = scmp.eq.s32.totalorder %s5517_s24, 1  ;;  %p128_p3 = scmp.ne.s32.totalorder %s5428_s19, %s5424_s18 }
   0xb   : > { %s6508_s26 = smov (%p37_p0, %s35_s26), 0  ;;  %p129_p5 = scmp.eq.s32.totalorder %s6485_s25, 1 }
   0xc   : > { %p5529_p4 = por %p123_p2, %p122_p1  ;;  %s107_s29 = ssub.s32 %s5440_s22, %s6508_s26 }
   0xd   : > { %p4286_p6 = scmp.ge.s32.totalorder %s5444_s23, 1  ;;  %p110_p7 = scmp.eq.s32.totalorder %s107_s29, 0 }
   0xe   : > { %s6486_s28 = scalar_select %p5529_p4, 1, 0 }
   0xf   : > { %p5538_p8 = por %p129_p5, %p128_p3  ;;  %p188_p9 = scmp.lt.s32.totalorder %s5444_s23, 3 }
  0x10   : > { %s5544_s6 = scalar_select %p110_p7, %s5432_s20, %s112_s27  }
  0x11   : > { %s6487_s30 = scalar_select %p5538_p8, 1, 0 }
  0x12   : > { %p5546_p10 = pnand %p4286_p6, %p188_p9  ;;  %p6482_p11 = scmp.eq.s32.totalorder %s5517_s24, 0 }
  0x13   : > { %s5446_s8 = smov [#allocation3]   ;;  %s5274_s13 = scalar_lea.hbm %s6477_s1, 27648 }
  0x14   : > { %s6488_s7 = scalar_select %p5546_p10, 1, 0 }
  0x15   : > { %p4966_p12 = pneg %p5546_p10  ;;  %s200_s9 = sshll.u32 %s5446_s8, 4  ;;  %s201_s9 = int_to_ptr.vmem [resolvable:$true] %s200_s9 }
  0x16   : > { %p5275_p0 = scmp.ne.s32.totalorder %s6477_s1, %s5274_s13  ;;  %p5281_p5 = scmp.lt.u32.totalorder %s5274_s13, %s6477_s1 }
  0x17   : > { %p5555_p13 = pnand %p6482_p11, %p4966_p12 }
  0x19   : > { %p5276_p1 = pneg %p5555_p13 }
  0x1b   : > { %p5277_p2 = pnand %p5276_p1, %p5275_p0 }
  0x1d   : > { %p5278_p3 = pneg %p5277_p2 }
  0x1f   : > { %p5283_p6 = pnand %p5281_p5, %p5278_p3 }
  0x21   : > { %5286 = shalt.err (!%p5283_p6)
}
  0x22   : > { %s5287_s27 = scalar_lea.vmem %s201_s9, 27648  ;;  %p5295_p11 = scmp.lt.s32.totalorder %s201_s9, %s201_s9 }
  0x23   : > { %p5288_p7 = scmp.ne.s32.totalorder %s201_s9, %s5287_s27  ;;  %p5296_p8 = scmp.lt.s32.totalorder %s5287_s27, %s5287_s27 }
  0x25   : > { %p5290_p9 = pnand %p5288_p7, %p5276_p1  ;;  %p5297_p4 = por %p5296_p8, %p5295_p11 }
  0x27   : > { %p5291_p12 = pneg %p5290_p9 }
  0x29   : > { %p5298_p10 = pnand %p5297_p4, %p5291_p12 }
  0x2b   : > { %5301 = shalt.err (!%p5298_p10)
}
  0x2c   : > { %s5447_s29 = smov 64   ;;  %s5448_s8 = smov 4  }
  0x2d   : > { %4969 = dma.hbm_to_vmem [thread:$0]  (!%p5555_p13), %s6477_s1, 27648, %s201_s9, [#allocation4], %s5447_s29, %s5447_s29, %s5448_s8  }
  0x2e   : > { %p6490_p0 = scmp.ne.s32.totalorder %s6488_s7, 0 }
  0x2f   : > { %p6491_p2 = scmp.eq.s32.totalorder (!%p6490_p0), %s5517_s24, 0 }
  0x30   : > { %227 = sbr.rel (%p6490_p0) target bundleno = 582 (0x246), region = 32 }
  0x37   : > { %5411 = dma.done.wait (%p6491_p2), [#allocation4], 27648   ;;  %p6492_p1 = pmov %p6491_p2 }
  0x38   : > { %v5038_v0 = vld [vmem:[#allocation3 + $0x40] sm:$0xff]   ;;  %v5042_v4 = vld [vmem:[#allocation3 + $0x48] sm:$0xff]   ;;  %v5046_v8 = vld [vmem:[#allocation3 + $0x50] sm:$0xff]   ;;  %p263_p4 = scmp.lt.s32.totalorder %s5436_s21, 1  ;;  %v310_v20 = vlaneseq  ;;  %v5449_v22 = vmov 1983009808  }
  0x39   : > { %5413 = vsyncadd (%p6492_p1), [#allocation4], 4294939648  ;;  %v5039_v1 = vld [vmem:[#allocation3] sm:$0xff]   ;;  %4561 = vmatprep.subr.bf16.mxu0 %v5038_v0  ;;  %v5043_v5 = vld [vmem:[#allocation3 + $0x8] sm:$0xff]   ;;  %v308_v23 = vunpack.c.l.s4 %v5449_v22  ;;  %vm407_vm0 = vsmask.f32 1280 }
  0x3a   : > { %v5040_v2 = vld [vmem:[#allocation3 + $0xc0] sm:$0xff]   ;;  %4562 = vmatpush3.bf16.msra.mxu0 %v5039_v1  ;;  %v5044_v6 = vld [vmem:[#allocation3 + $0xc8] sm:$0xff]   ;;  %v5047_v9 = vld [vmem:[#allocation3 + $0x10] sm:$0xff]   ;;  %s264_s7 = scalar_select %p263_p4, %s5436_s21, 1  ;;  %vm408_vm1 = vsmask.f32 3336 }
  0x3b   : > { %v5041_v3 = vld [vmem:[#allocation3 + $0x80] sm:$0xff]   ;;  %4589 = vmatprep.subr.bf16.mxu1 %v5040_v2  ;;  %4563 = vmatprep.subr.bf16.mxu0 %v5042_v4  ;;  %v5045_v7 = vld [vmem:[#allocation3 + $0x88] sm:$0xff]   ;;  %v5048_v10 = vld [vmem:[#allocation3 + $0xd0] sm:$0xff]   ;;  %v311_v27 = vshrl.u32 %v310_v20, 7  ;;  %v309_v29 = vunpack.c.0.s8 %v308_v23  ;;  %vm410_vm2 = vsmask.f32 5392 }
  0x3c   : > { %4590 = vmatpush3.bf16.msra.mxu1 %v5041_v3  ;;  %v5049_v11 = vld [vmem:[#allocation3 + $0x90] sm:$0xff]   ;;  %v5050_v12 = vld [vmem:[#allocation3 + $0x58] sm:$0xff]   ;;  %v5054_v16 = vld [vmem:[#allocation3 + $0x60] sm:$0xff]   ;;  %s4955_s9 = smul.u32 96, %s264_s7  ;;  %vm412_vm3 = vsmask.f32 7448 }
  0x3d   : > { %4591 = vmatprep.subr.bf16.mxu1 %v5044_v6  ;;  %v5051_v13 = vld [vmem:[#allocation3 + $0x18] sm:$0xff]   ;;  %v5055_v17 = vld [vmem:[#allocation3 + $0x20] sm:$0xff]   ;;  %v5058_v21 = vld [vmem:[#allocation3 + $0x68] sm:$0xff]   ;;  %v5588_v34 = vsub.s32 %v309_v29, %v311_v27  ;;  %vm564_vm4 = vcmask 1040384   ;;  %vm565_vm6 = vcmask 1042434   ;;  %vm567_vm7 = vcmask 1044484  }
  0x3e   : > { %4564 = vmatpush3.bf16.msra.mxu0 %v5043_v5  ;;  %v5052_v14 = vld [vmem:[#allocation3 + $0xd8] sm:$0xff]   ;;  %v5056_v18 = vld [vmem:[#allocation3 + $0xe0] sm:$0xff]   ;;  %v5059_v24 = vld [vmem:[#allocation3 + $0x28] sm:$0xff]   ;;  %s5586_s14 = scalar_lea.vmem %s6476_s0, %s4955_s9  ;;  %vm569_vm11 = vcmask 1046534   ;;  %s6341_s17 = sand.u32 1, %s5428_s19  }
  0x3f   : > { %4565 = vmatprep.subr.bf16.mxu0 %v5046_v8  ;;  %v5053_v15 = vld [vmem:[#allocation3 + $0x98] sm:$0xff]   ;;  %v5057_v19 = vld [vmem:[#allocation3 + $0xa0] sm:$0xff]   ;;  %v5060_v25 = vld [vmem:[#allocation3 + $0xe8] sm:$0xff]   ;;  %s6344_s27 = scalar_lea.vmem [#allocation7], %s6341_s17  ;;  %s6348_s29 = scalar_lea.vmem [#allocation9], %s6341_s17 }
  0x40   : > { %4592 = vmatpush3.bf16.msra.mxu1 %v5045_v7  ;;  %v5061_v26 = vld [vmem:[#allocation3 + $0xa8] sm:$0xff]   ;;  %v5062_v28 = vld [vmem:[#allocation3 + $0x70] sm:$0xff]   ;;  %v5066_v33 = vld [vmem:[#allocation3 + $0x78] sm:$0xff]   ;;  %s4291_s8 = sshll.u32 %s6341_s17, 4  ;;  %s4549_s7 = sshll.u32 %s5436_s21, 8 }
  0x41   : > { %4593 = vmatprep.subr.bf16.mxu1 %v5048_v10  ;;  %v5063_v30 = vld [vmem:[#allocation3 + $0x30] sm:$0xff]   ;;  %v5067_v35 = vld [vmem:[#allocation3 + $0x38] sm:$0xff]   ;;  %v5591_v37 = vld [vmem:[%s5586_s14] sm:$0x7]  ;;  %s250_s11 = scalar_lea.vmem [#allocation6], %s4291_s8  ;;  %s6358_s13 = scalar_lea.hbm %s6479_s3, %s4549_s7 }
  0x42   : > { %4566 = vmatpush3.bf16.msra.mxu0 %v5047_v9  ;;  %v5064_v31 = vld [vmem:[#allocation3 + $0xf0] sm:$0xff]   ;;  %v5068_v36 = vld [vmem:[#allocation3 + $0xf8] sm:$0xff]   ;;  %v5594_v38 = vld [vmem:[%s5586_s14 + $0x4] sm:$0x7]  ;;  %v5607_v42 = vrot.slane %v5591_v37, %v5588_v34  ;;  %s4118_s12 = sshll.u32 %s250_s11, 4  ;;  %p6499_p10 = scmp.ne.s32.totalorder %s6486_s28, 0  ;;  %s6353_s12 = int_to_ptr.vmem [resolvable:$true] %s4118_s12 }
  0x43   : > { %4567 = vmatprep.subr.bf16.mxu0 %v5050_v12  ;;  %v5065_v32 = vld [vmem:[#allocation3 + $0xb0] sm:$0xff]   ;;  %v5597_v39 = vld [vmem:[%s5586_s14 + $0x8] sm:$0x7]  ;;  %v5600_v40 = vld [vmem:[%s5586_s14 + $0xc] sm:$0x7]  ;;  %v5611_v43 = vrot.slane %v5594_v38, %v5588_v34  ;;  %v305_v49 = vcombine.low %v5591_v37, %v5594_v38  ;;  %s5302_s15 = scalar_lea.vmem %s6353_s12, 256 }
  0x44   : > { %4594 = vmatpush3.bf16.msra.mxu1 %v5049_v11  ;;  %v5603_v41 = vld [vmem:[%s5586_s14 + $0x10] sm:$0x7]  ;;  %v5615_v44 = vrot.slane %v5597_v39, %v5588_v34  ;;  %v5619_v45 = vrot.slane %v5600_v40, %v5588_v34  ;;  %vm5623_vm5 = vmor %vm407_vm0, %vm408_vm1  ;;  %v5069_v48 = vld [vmem:[#allocation3 + $0xb8] sm:$0xff]   ;;  %v5635_v50 = vcombine.high %v5607_v42, %v5607_v42  ;;  %v415_v53 = vshrl.u32 %v5607_v42, 16  ;;  %p5303_p8 = scmp.ne.s32.totalorder %s6353_s12, %s5302_s15  ;;  %s5451_s16 = smov [#allocation6]  }
  0x45   : > { %4595 = vmatprep.subr.bf16.mxu1 %v5052_v14  ;;  %v5629_v47 = vrot.slane %v5603_v41, %v5588_v34  ;;  %v5639_v51 = vcombine.high %v5611_v43, %v5611_v43  ;;  %v5073_v54 = vld [vmem:[#allocation3 + $0x140] sm:$0xff]   ;;  %v418_v56 = vshll.u32 %v5607_v42, 16  ;;  %v429_v57 = vshrl.u32 %v5611_v43, 16  ;;  %vm411_vm8 = vmor %vm5623_vm5, %vm410_vm2  ;;  %s5306_s8 = sshll.u32 %s5451_s16, 4  ;;  %s5307_s8 = int_to_ptr.vmem [resolvable:$false] %s5306_s8 }
  0x46   : > { %4568 = vmatpush3.bf16.msra.mxu0 %v5051_v13  ;;  %v5643_v52 = vcombine.high %v5615_v44, %v5615_v44  ;;  %v5648_v55 = vcombine.high %v5619_v45, %v5619_v45  ;;  %v432_v58 = vshll.u32 %v5611_v43, 16  ;;  %v417_v59 = vrot.slane %v415_v53, 6  ;;  %v5077_v11 = vld [vmem:[#allocation3 + $0x1c0] sm:$0xff]   ;;  %vm5663_vm9 = vmor %vm411_vm8, %vm412_vm3  ;;  %p5304_p11 = pnand %p5303_p8, %p6499_p10  ;;  %s5308_s25 = scalar_lea.vmem %s5307_s8, 512 }
  0x47   : > { %4569 = vmatprep.subr.bf16.mxu0 %v5054_v16  ;;  %v424_v60 = vshll.u32 %v5635_v50, 16  ;;  %v438_v61 = vshll.u32 %v5639_v51, 16  ;;  %v443_v62 = vshrl.u32 %v5615_v44, 16  ;;  %v420_v63 = vrot.slane %v418_v56, 7  ;;  %vm566_vm10 = vmor %vm564_vm4, %vm565_vm6  ;;  %p5309_p3 = scmp.lt.s32.totalorder %s6353_s12, %s5307_s8  ;;  %p5310_p5 = scmp.lt.s32.totalorder %s5308_s25, %s5302_s15 }
  0x48   : > { %4596 = vmatpush3.bf16.msra.mxu1 %v5053_v15  ;;  %v431_v0 = vrot.slane %v429_v57, 6  ;;  %v434_v1 = vrot.slane %v432_v58, 7  ;;  %v446_v2 = vshll.u32 %v5615_v44, 16  ;;  %v452_v6 = vshll.u32 %v5643_v52, 16  ;;  %vm568_vm12 = vmor %vm566_vm10, %vm567_vm7  ;;  %p5305_p13 = pneg %p5304_p11 }
  0x49   : > { %4597 = vmatprep.subr.bf16.mxu1 %v5056_v18  ;;  %v426_v3 = vrot.slane %v424_v60, 7  ;;  %v440_v4 = vrot.slane %v438_v61, 7  ;;  %v445_v5 = vrot.slane %v443_v62, 6  ;;  %v421_v7 = vor.u32 %v420_v63, %v417_v59  ;;  %vm5710_vm13 = vmor %vm568_vm12, %vm569_vm11  ;;  %v5271_v59 = vld [vmem:[#allocation3 + $0x638] sm:$0xff]   ;;  %p5311_p6 = por %p5310_p5, %p5309_p3 }
  0x4a   : > { %4570 = vmatpush3.bf16.msra.mxu0 %v5055_v17  ;;  %v435_v8 = vor.u32 %v434_v1, %v431_v0  ;;  %v448_v9 = vrot.slane %v446_v2, 7  ;;  %v457_v10 = vshrl.u32 %v5619_v45, 16  ;;  %v454_v13 = vrot.slane %v452_v6, 7  ;;  %v5079_v6 = vld [vmem:[#allocation3 + $0x148] sm:$0xff]  }
  0x4b   : > { %4571 = vmatprep.subr.bf16.mxu0 %v5058_v21  ;;  %v460_v14 = vshll.u32 %v5619_v45, 16  ;;  %v466_v15 = vshll.u32 %v5648_v55, 16  ;;  %v306_v16 = vcombine.low %v5597_v39, %v5600_v40  ;;  %v422_v17 = vrot.slane %v421_v7, 2  ;;  %p5312_p7 = pnand %p5311_p6, %p5305_p13 }
  0x4c   : > { %4598 = vmatpush3.bf16.msra.mxu1 %v5057_v19  ;;  %v436_v18 = vrot.slane %v435_v8, 2  ;;  %v449_v19 = vor.u32 %v448_v9, %v445_v5  ;;  %v459_v20 = vrot.slane %v457_v10, 6  ;;  %v688_v22 = vcombine.high %v5629_v47, %v5629_v47 }
  0x4d   : > { %4599 = vmatprep.subr.bf16.mxu1 %v5060_v25  ;;  %v462_v21 = vrot.slane %v460_v14, 7  ;;  %v698_v23 = vshrl.u32 %v5629_v47, 16  ;;  %v427_v25 = vsel %vm5663_vm9, %v422_v17, %v426_v3  ;;  %v5693_v53 = vrot.slane %v306_v16, %v5588_v34  ;;  %v5080_v16 = vld [vmem:[#allocation3 + $0x108] sm:$0xff]  }
  0x4e   : > { %4572 = vmatpush3.bf16.msra.mxu0 %v5059_v24  ;;  %v701_v24 = vshll.u32 %v5629_v47, 16  ;;  %v450_v27 = vrot.slane %v449_v19, 2  ;;  %v707_v37 = vshll.u32 %v688_v22, 16  ;;  %v573_v61 = vrot.slane %v5635_v50, 7 }
  0x4f   : > { %4573 = vmatprep.subr.bf16.mxu0 %v5062_v28  ;;  %v468_v28 = vrot.slane %v466_v15, 7  ;;  %v463_v29 = vor.u32 %v462_v21, %v459_v20  ;;  %v4294_v62 = vrot.slane %v5611_v43, 9  ;;  %v577_v63 = vrot.slane %v5639_v51, 7  ;;  %v5083_v20 = vld [vmem:[#allocation3 + $0x150] sm:$0xff]  }
  0x50   : > { %4600 = vmatpush3.bf16.msra.mxu1 %v5061_v26  ;;  %v5679_v26 = vsel %vm5663_vm9, %v436_v18, %v440_v4  ;;  %v709_v60 = vrot.slane %v707_v37, 7  ;;  %v5076_v4 = vld [vmem:[#allocation3 + $0x100] sm:$0xff]   ;;  %v4295_v50 = vrot.slane %v5615_v44, 9  ;;  %v581_v43 = vrot.slane %v5643_v52, 7 }
  0x51   : > { %4601 = vmatprep.subr.bf16.mxu1 %v5064_v31  ;;  %v703_v31 = vrot.slane %v701_v24, 7  ;;  %v4296_v8 = vrot.slane %v5619_v45, 9  ;;  %v585_v9 = vrot.slane %v5648_v55, 7  ;;  %v4301_v44 = vrot.slane %v5629_v47, 9  ;;  %v5078_v47 = vld [vmem:[#allocation3 + $0x180] sm:$0xff]   ;;  %v5081_v24 = vld [vmem:[#allocation3 + $0x1c8] sm:$0xff]  }
  0x52   : > { %4574 = vmatpush3.bf16.msra.mxu0 %v5063_v30  ;;  %v700_v30 = vrot.slane %v698_v23, 6  ;;  %v582_v10 = vsel %vm5710_vm13, %v4295_v50, %v581_v43 }
  0x53   : > { %4575 = vmatprep.subr.bf16.mxu0 %v5066_v33  ;;  %v526_v33 = vcombine.low %v427_v25, %v5679_v26  ;;  %v586_v52 = vsel %vm5710_vm13, %v4296_v8, %v585_v9 }
  0x54   : > { %4602 = vmatpush3.bf16.msra.mxu1 %v5065_v32  ;;  %v643_v32 = vcombine.low %v5594_v38, %v5597_v39  ;;  %v704_v46 = vor.u32 %v703_v31, %v700_v30  ;;  %v644_v38 = vcombine.low %v5600_v40, %v5603_v41  ;;  %v4293_v40 = vrot.slane %v5607_v42, 9  ;;  %v5766_v30 = vld [vmem:[%s5586_s14 + $0x18] sm:$0x7]  ;;  %v5769_v31 = vld [vmem:[%s5586_s14 + $0x1c] sm:$0x7] }
  0x55   : > { %4603 = vmatprep.subr.bf16.mxu1 %v5068_v36  ;;  %v464_v36 = vrot.slane %v463_v29, 2  ;;  %v534_v58 = vrot.slane %v526_v33, %v5588_v34  ;;  %v578_v42 = vsel %vm5710_vm13, %v4294_v62, %v577_v63  ;;  %v604_v14 = vcombine.low %v582_v10, %v586_v52  ;;  %v5084_v29 = vld [vmem:[#allocation3 + $0x110] sm:$0xff]   ;;  %v5773_v33 = vld [vmem:[%s5586_s14 + $0x20] sm:$0x7] }
  0x56   : > { %4576 = vmatpush3.bf16.msra.mxu0 %v5067_v35  ;;  %v5688_v35 = vsel %vm5663_vm9, %v450_v27, %v454_v13  ;;  %v651_v56 = vrot.slane %v643_v32, %v5588_v34  ;;  %v705_v1 = vrot.slane %v704_v46, 2  ;;  %v574_v5 = vsel %vm5710_vm13, %v4293_v40, %v573_v61  ;;  %v5085_v61 = vld [vmem:[#allocation3 + $0x1d0] sm:$0xff]  }
  0x57   : > { %4617 = vmatprep.subr.bf16.mxu0 %v5073_v54  ;;  %v5699_v39 = vsel %vm5663_vm9, %v464_v36, %v468_v28  ;;  %v5702_v54 = vld [vmem:[%s5586_s14 + $0x14] sm:$0x7]  ;;  %v765_v13 = vrot.slane %v688_v22, 7  ;;  %v771_v17 = vcombine.low %v578_v42, %v582_v10  ;;  %v5751_v19 = vrot.slane %v604_v14, %v5588_v34  ;;  %v5776_v36 = vld [vmem:[%s5586_s14 + $0x24] sm:$0x7] }
  0x58   : > { %4604 = vmatpush3.bf16.msra.mxu1 %v5069_v48  ;;  %v313_v48 = vrot.slane %v305_v49, %v5588_v34  ;;  %v527_v57 = vcombine.low %v5688_v35, %v5699_v39  ;;  %v658_v49 = vrot.slane %v644_v38, %v5588_v34  ;;  %v5731_v7 = vrot.slane %v5702_v54, %v5588_v34 }
  0x59   : > { %4645 = vmatprep.subr.bf16.mxu1 %v5077_v11  ;;  %v603_v11 = vcombine.low %v574_v5, %v578_v42  ;;  %v5743_v45 = vsel %vm5710_vm13, %v4301_v44, %v765_v13  ;;  %v5747_v55 = vsel %vm5663_vm9, %v705_v1, %v709_v60  ;;  %v725_v22 = vcombine.low %v5679_v26, %v5688_v35  ;;  %v5082_v60 = vld [vmem:[#allocation3 + $0x188] sm:$0xff]   ;;  %v5106_v35 = vld [vmem:[#allocation3 + $0x1b0] sm:$0xff]  }
  0x5a   : > { %v5719_v0 = vrot.slane %v527_v57, %v5588_v34  ;;  %v321_v2 = vcombine.low %v313_v48, %v5693_v53  ;;  %v659_v3 = vcombine.low %v651_v56, %v658_v49  ;;  %v772_v18 = vcombine.low %v586_v52, %v5743_v45  ;;  %v5087_v56 = vld [vmem:[#allocation3 + $0x158] sm:$0xff]  }
  0x5b   : > { %v611_v15 = vrot.slane %v603_v11, %v5588_v34  ;;  %v850_v21 = vshrl.u32 %v5731_v7, 16  ;;  %v811_v23 = vcombine.low %v5603_v41, %v5702_v54  ;;  %v726_v25 = vcombine.low %v5699_v39, %v5747_v55  ;;  %v5089_v11 = vld [vmem:[#allocation3 + $0x1d8] sm:$0xff]  }
  0x5c   : > { %v542_v51 = vcombine.low %v534_v58, %v5719_v0  ;;  %3435 = vmatprep.mubr.bf16.mxu1 %v659_v3  ;;  %v5763_v28 = vcombine.high %v5731_v7, %v5731_v7  ;;  %v853_v32 = vshll.u32 %v5731_v7, 16  ;;  %v5780_v37 = vrot.slane %v5766_v30, %v5588_v34  ;;  %v5088_v3 = vld [vmem:[#allocation3 + $0x118] sm:$0xff]  }
  0x5d   : > { %v619_v27 = vcombine.low %v611_v15, %v5751_v19  ;;  %v5784_v46 = vrot.slane %v5769_v31, %v5588_v34  ;;  %v5787_v48 = vrot.slane %v771_v17, %v5588_v34  ;;  %v5790_v38 = vrot.slane %v772_v18, %v5588_v34  ;;  %v5092_v15 = vld [vmem:[#allocation3 + $0x120] sm:$0xff]   ;;  %v5109_v39 = vld [vmem:[#allocation3 + $0x1f8] sm:$0xff]  }
  0x5e   : > { %3386 = vmatprep.mubr.bf16.mxu0 %v542_v51  ;;  %v5794_v57 = vrot.slane %v5773_v33, %v5588_v34  ;;  %v5798_v58 = vrot.slane %v5776_v36, %v5588_v34  ;;  %v322_v49 = vcombine.low %v5766_v30, %v5769_v31  ;;  %v5802_v40 = vrot.slane %v850_v21, 6  ;;  %v5090_v30 = vld [vmem:[#allocation3 + $0x198] sm:$0xff]  }
  0x5f   : > { %3387 = vmatmul.mubr.bf16.vlgmr.msra.gmra.mrb[0].mxu0 %v321_v2  ;;  %3436 = vmatmul.mubr.bf16.vlgmr.msra.gmra.mrb[0].mxu1 %v619_v27  ;;  %v5806_v62 = vcombine.high %v5780_v37, %v5780_v37  ;;  %v5810_v63 = vcombine.high %v5784_v46, %v5784_v46  ;;  %v471_v1 = vshrl.u32 %v5780_v37, 16  ;;  %v474_v2 = vshll.u32 %v5780_v37, 16 }
  0x60   : > { %4618 = vmatpush3.bf16.msra.mxu0 %v5076_v4  ;;  %4646 = vmatpush3.bf16.msra.mxu1 %v5078_v47  ;;  %v5091_v4 = vld [vmem:[#allocation3 + $0x160] sm:$0xff]   ;;  %v5816_v5 = vcombine.high %v5794_v57, %v5794_v57  ;;  %v5820_v42 = vcombine.high %v5798_v58, %v5798_v58  ;;  %v485_v50 = vshrl.u32 %v5784_v46, 16  ;;  %v5823_v43 = vrot.slane %v853_v32, 7  ;;  %v5095_v32 = vld [vmem:[#allocation3 + $0x168] sm:$0xff]  }
  0x61   : > { %4619 = vmatprep.subr.bf16.mxu0 %v5079_v6  ;;  %4647 = vmatprep.subr.bf16.mxu1 %v5081_v24  ;;  %v5086_v6 = vld [vmem:[#allocation3 + $0x190] sm:$0xff]   ;;  %v473_v51 = vrot.slane %v471_v1, 6  ;;  %v476_v8 = vrot.slane %v474_v2, 7  ;;  %v480_v9 = vshll.u32 %v5806_v62, 16  ;;  %v488_v10 = vshll.u32 %v5784_v46, 16 }
  0x62   : > { %v487_v44 = vrot.slane %v485_v50, 6  ;;  %v494_v13 = vshll.u32 %v5810_v63, 16  ;;  %v499_v52 = vshrl.u32 %v5794_v57, 16  ;;  %v502_v14 = vshll.u32 %v5794_v57, 16 }
  0x63   : > { %v477_v47 = vor.u32 %v476_v8, %v473_v51  ;;  %v490_v17 = vrot.slane %v488_v10, 7  ;;  %v508_v18 = vshll.u32 %v5816_v5, 16  ;;  %v513_v27 = vshrl.u32 %v5798_v58, 16 }
  0x64   : > { %4620 = vmatpush3.bf16.msra.mxu0 %v5080_v16  ;;  %4648 = vmatpush3.bf16.msra.mxu1 %v5082_v60  ;;  %v482_v16 = vrot.slane %v480_v9, 7  ;;  %v501_v21 = vrot.slane %v499_v52, 6  ;;  %v504_v24 = vrot.slane %v502_v14, 7  ;;  %v516_v2 = vshll.u32 %v5798_v58, 16 }
  0x65   : > { %4621 = vmatprep.subr.bf16.mxu0 %v5083_v20  ;;  %4649 = vmatprep.subr.bf16.mxu1 %v5085_v61  ;;  %v496_v20 = vrot.slane %v494_v13, 7  ;;  %v491_v1 = vor.u32 %v490_v17, %v487_v44  ;;  %v510_v60 = vrot.slane %v508_v18, 7  ;;  %v515_v51 = vrot.slane %v513_v27, 6  ;;  %v5093_v44 = vld [vmem:[#allocation3 + $0x1e0] sm:$0xff]  }
  0x66   : > { %v505_v50 = vor.u32 %v504_v24, %v501_v21  ;;  %v522_v61 = vshll.u32 %v5820_v42, 16  ;;  %v323_v8 = vcombine.low %v5773_v33, %v5776_v36  ;;  %v518_v10 = vrot.slane %v516_v2, 7 }
  0x67   : > { %v330_v13 = vrot.slane %v322_v49, %v5588_v34  ;;  %v660_v17 = vcombine.low %v5769_v31, %v5773_v33  ;;  %v593_v2 = vrot.slane %v5810_v63, 7  ;;  %v4300_v63 = vrot.slane %v5798_v58, 9 }
  0x68   : > { %4622 = vmatpush3.bf16.msra.mxu0 %v5084_v29  ;;  %v5833_v29 = vld [vmem:[%s5586_s14 + $0x28] sm:$0x7]  ;;  %4650 = vmatpush3.bf16.msra.mxu1 %v5086_v6  ;;  %v506_v52 = vrot.slane %v505_v50, 2  ;;  %v524_v14 = vrot.slane %v522_v61, 7  ;;  %v5094_v6 = vld [vmem:[#allocation3 + $0x1a0] sm:$0xff]   ;;  %v519_v18 = vor.u32 %v518_v10, %v515_v51  ;;  %v4299_v50 = vrot.slane %v5794_v57, 9 }
  0x69   : > { %4623 = vmatprep.subr.bf16.mxu0 %v5087_v56  ;;  %v478_v56 = vrot.slane %v477_v47, 2  ;;  %4651 = vmatprep.subr.bf16.mxu1 %v5089_v11  ;;  %v5843_v47 = vrot.slane %v323_v8, %v5588_v34  ;;  %v661_v49 = vcombine.low %v5776_v36, %v5833_v29  ;;  %v5855_v11 = vrot.slane %v5833_v29, %v5588_v34  ;;  %v5099_v36 = vld [vmem:[#allocation3 + $0x1e8] sm:$0xff]   ;;  %v5104_v51 = vld [vmem:[#allocation3 + $0x130] sm:$0xff]   ;;  %v5107_v8 = vld [vmem:[#allocation3 + $0x178] sm:$0xff]  }
  0x6a   : > { %v5859_v21 = vsel %vm5663_vm9, %v506_v52, %v510_v60  ;;  %v520_v24 = vrot.slane %v519_v18, 2  ;;  %v4298_v60 = vrot.slane %v5784_v46, 9  ;;  %v818_v26 = vrot.slane %v811_v23, %v5588_v34 }
  0x6b   : > { %v483_v9 = vsel %vm5663_vm9, %v478_v56, %v482_v16  ;;  %v5863_v33 = vcombine.low %v330_v13, %v5843_v47  ;;  %v675_v27 = vrot.slane %v661_v49, %v5588_v34  ;;  %v4297_v56 = vrot.slane %v5780_v37, 9 }
  0x6c   : > { %4624 = vmatpush3.bf16.msra.mxu0 %v5088_v3  ;;  %v492_v3 = vrot.slane %v491_v1, 2  ;;  %4652 = vmatpush3.bf16.msra.mxu1 %v5090_v30  ;;  %v5875_v30 = vsel %vm5663_vm9, %v520_v24, %v524_v14  ;;  %v594_v57 = vsel %vm5710_vm13, %v4298_v60, %v593_v2  ;;  %v856_v13 = vor.u32 %v5823_v43, %v5802_v40  ;;  %v5108_v40 = vld [vmem:[#allocation3 + $0x138] sm:$0xff]   ;;  %v284_v2 = vld [vmem:[%s5586_s14 + $0x2c] sm:$0x7] }
  0x6d   : > { %4625 = vmatprep.subr.bf16.mxu0 %v5091_v4  ;;  %v5096_v4 = vld [vmem:[#allocation3 + $0x128] sm:$0xff]   ;;  %4653 = vmatprep.subr.bf16.mxu1 %v5093_v44  ;;  %v544_v46 = vcombine.low %v5859_v21, %v5875_v30  ;;  %v859_v44 = vshll.u32 %v5763_v28, 16  ;;  %v696_v14 = vcombine.high %v5855_v11, %v5855_v11  ;;  %v715_v41 = vshll.u32 %v5855_v11, 16 }
  0x6e   : > { %v5849_v16 = vsel %vm5663_vm9, %v492_v3, %v496_v20  ;;  %v5103_v20 = vld [vmem:[#allocation3 + $0x170] sm:$0xff]   ;;  %v5102_v3 = vld [vmem:[#allocation3 + $0x1a8] sm:$0xff]   ;;  %v857_v43 = vrot.slane %v856_v13, 2  ;;  %v5112_v13 = vld [vmem:[#allocation3 + $0x200] sm:$0xff]  }
  0x6f   : > { %v543_v31 = vcombine.low %v483_v9, %v5849_v16  ;;  %v601_v9 = vrot.slane %v5820_v42, 7  ;;  %v5895_v52 = vrot.slane %v544_v46, %v5588_v34  ;;  %v5105_v42 = vld [vmem:[#allocation3 + $0x1f0] sm:$0xff]   ;;  %v861_v18 = vrot.slane %v859_v44, 7 }
  0x70   : > { %4626 = vmatpush3.bf16.msra.mxu0 %v5092_v15  ;;  %v668_v15 = vrot.slane %v660_v17, %v5588_v34  ;;  %4654 = vmatpush3.bf16.msra.mxu1 %v5094_v6  ;;  %v721_v54 = vshll.u32 %v696_v14, 16 }
  0x71   : > { %4627 = vmatprep.subr.bf16.mxu0 %v5095_v32  ;;  %v589_v32 = vrot.slane %v5806_v62, 7  ;;  %v551_v1 = vrot.slane %v543_v31, %v5588_v34  ;;  %v597_v62 = vrot.slane %v5816_v5, 7  ;;  %4655 = vmatprep.subr.bf16.mxu1 %v5099_v36  ;;  %v602_v58 = vsel %vm5710_vm13, %v4300_v63, %v601_v9  ;;  %v5111_v36 = vld [vmem:[#allocation3 + $0x240] sm:$0xff]  }
  0x72   : > { %v5877_v61 = vcombine.low %v668_v15, %v675_v27  ;;  %v787_v31 = vcombine.low %v5787_v48, %v5790_v38  ;;  %v862_v27 = vsel %vm5663_vm9, %v857_v43, %v861_v18  ;;  %v740_v48 = vrot.slane %v726_v25, %v5588_v34  ;;  %v5117_v43 = vld [vmem:[#allocation3 + $0x2c8] sm:$0xff]  }
  0x73   : > { %v590_v37 = vsel %vm5710_vm13, %v4297_v56, %v589_v32  ;;  %v598_v10 = vsel %vm5710_vm13, %v4299_v50, %v597_v62  ;;  %v5904_v49 = vcombine.low %v551_v1, %v5895_v52  ;;  %v769_v56 = vrot.slane %v696_v14, 7  ;;  %v5110_v50 = vld [vmem:[#allocation3 + $0x1b8] sm:$0xff]  }
  0x74   : > { %4628 = vmatpush3.bf16.msra.mxu0 %v5096_v4  ;;  %3443 = vmatprep.mubr.bf16.mxu1 %v5877_v61  ;;  %v620_v5 = vcombine.low %v590_v37, %v594_v57  ;;  %v4302_v4 = vrot.slane %v5855_v11, 9  ;;  %v621_v17 = vcombine.low %v598_v10, %v602_v58  ;;  %v788_v15 = vcombine.low %v594_v57, %v598_v10 }
  0x75   : > { %4629 = vmatprep.subr.bf16.mxu0 %v5103_v20  ;;  %v733_v20 = vrot.slane %v725_v22, %v5588_v34  ;;  %4656 = vmatpush3.bf16.msra.mxu1 %v5102_v3  ;;  %v877_v22 = vcombine.low %v5747_v55, %v862_v27  ;;  %v712_v38 = vshrl.u32 %v5855_v11, 16  ;;  %v5943_v37 = vrot.slane %v284_v2, %v5588_v34 }
  0x76   : > { %v628_v6 = vrot.slane %v620_v5, %v5588_v34  ;;  %v5913_v24 = vrot.slane %v621_v17, %v5588_v34  ;;  %3394 = vmatprep.mubr.bf16.mxu0 %v5904_v49  ;;  %4657 = vmatprep.subr.bf16.mxu1 %v5105_v42  ;;  %v5934_v25 = vsel %vm5710_vm13, %v4302_v4, %v769_v56  ;;  %v723_v57 = vrot.slane %v721_v54, 7  ;;  %v5115_v42 = vld [vmem:[#allocation3 + $0x248] sm:$0xff]   ;;  %v5125_v54 = vld [vmem:[#allocation3 + $0x218] sm:$0xff]  }
  0x77   : > { %3395 = vmatmul.mubr.bf16.gmra.mrb[4].mxu0 %v5863_v33  ;;  %v884_v23 = vrot.slane %v877_v22, %v5588_v34  ;;  %v789_v55 = vcombine.low %v602_v58, %v5934_v25  ;;  %v796_v1 = vrot.slane %v788_v15, %v5588_v34  ;;  %v714_v60 = vrot.slane %v712_v38, 6  ;;  %v5114_v58 = vld [vmem:[#allocation3 + $0x280] sm:$0xff]   ;;  %v5123_v38 = vld [vmem:[#allocation3 + $0x290] sm:$0xff]  }
  0x78   : > { %4630 = vmatpush3.bf16.msra.mxu0 %v5104_v51  ;;  %v5930_v32 = vcombine.low %v628_v6, %v5913_v24  ;;  %3484 = vmatprep.mubr.bf16.mxu0 %v787_v31  ;;  %v717_v51 = vrot.slane %v715_v41, 7  ;;  %v741_v11 = vcombine.low %v733_v20, %v740_v48  ;;  %v5949_v9 = vcombine.high %v5943_v37, %v5943_v37  ;;  %v5120_v48 = vld [vmem:[#allocation3 + $0x210] sm:$0xff]  }
  0x79   : > { %4631 = vmatprep.subr.bf16.mxu0 %v5107_v8  ;;  %4658 = vmatpush3.bf16.msra.mxu1 %v5106_v35  ;;  %v885_v62 = vcombine.low %v5719_v0, %v884_v23  ;;  %v5113_v8 = vld [vmem:[#allocation3 + $0x2c0] sm:$0xff]   ;;  %v803_v46 = vrot.slane %v789_v55, %v5588_v34  ;;  %v864_v3 = vshrl.u32 %v5943_v37, 16  ;;  %v867_v10 = vshll.u32 %v5943_v37, 16  ;;  %v5122_v35 = vld [vmem:[#allocation3 + $0x2d0] sm:$0xff]   ;;  %v5126_v55 = vld [vmem:[#allocation3 + $0x2d8] sm:$0xff]  }
  0x7a   : > { %3444 = vmatmul.mubr.bf16.gmra.mrb[4].mxu1 %v5930_v32  ;;  %4659 = vmatprep.subr.bf16.mxu1 %v5109_v39  ;;  %v718_v63 = vor.u32 %v717_v51, %v714_v60  ;;  %v819_v5 = vcombine.low %v5693_v53, %v818_v26  ;;  %v742_v0 = vcombine.low %v5849_v16, %v5859_v21  ;;  %v873_v6 = vshll.u32 %v5949_v9, 16  ;;  %v5118_v16 = vld [vmem:[#allocation3 + $0x288] sm:$0xff]   ;;  %v5124_v39 = vld [vmem:[#allocation3 + $0x258] sm:$0xff]   ;;  %v5128_v51 = vld [vmem:[#allocation3 + $0x260] sm:$0xff]  }
  0x7b   : > { %3533 = vmatprep.mubr.bf16.mxu1 %v885_v62  ;;  %v5954_v44 = vcombine.low %v796_v1, %v803_v46  ;;  %v866_v4 = vrot.slane %v864_v3, 6  ;;  %v869_v17 = vrot.slane %v867_v10, 7  ;;  %v820_v15 = vcombine.low %v5833_v29, %v284_v2  ;;  %v5127_v2 = vld [vmem:[#allocation3 + $0x298] sm:$0xff]   ;;  %v5136_v3 = vld [vmem:[#allocation3 + $0x270] sm:$0xff]  }
  0x7c   : > { %4632 = vmatpush3.bf16.msra.mxu0 %v5108_v40  ;;  %v719_v14 = vrot.slane %v718_v63, 2  ;;  %v5116_v40 = vld [vmem:[#allocation3 + $0x208] sm:$0xff]   ;;  %v875_v31 = vrot.slane %v873_v6, 7  ;;  %v750_v20 = vrot.slane %v742_v0, %v5588_v34  ;;  %v4303_v1 = vrot.slane %v5731_v7, 9  ;;  %v5131_v7 = vld [vmem:[#allocation3 + $0x2a0] sm:$0xff]   ;;  %v5138_v10 = vld [vmem:[#allocation3 + $0x2f0] sm:$0xff]  }
  0x7d   : > { %4673 = vmatprep.subr.bf16.mxu0 %v5111_v36  ;;  %4660 = vmatpush3.bf16.msra.mxu1 %v5110_v50  ;;  %v870_v18 = vor.u32 %v869_v17, %v866_v4  ;;  %v5119_v36 = vld [vmem:[#allocation3 + $0x250] sm:$0xff]   ;;  %v827_v26 = vrot.slane %v820_v15, %v5588_v34  ;;  %v901_v50 = vrot.slane %v5763_v28, 7  ;;  %v5133_v28 = vld [vmem:[#allocation3 + $0x228] sm:$0xff]   ;;  %v4304_v62 = vrot.slane %v5943_v37, 9  ;;  %v5143_v4 = vld [vmem:[#allocation3 + $0x2b8] sm:$0xff]  }
  0x7e   : > { %4701 = vmatprep.subr.bf16.mxu1 %v5113_v8  ;;  %v724_v53 = vsel %vm5663_vm9, %v719_v14, %v723_v57  ;;  %v5134_v8 = vld [vmem:[#allocation3 + $0x2e8] sm:$0xff]   ;;  %v905_v46 = vrot.slane %v5949_v9, 7  ;;  %v5139_v9 = vld [vmem:[#allocation3 + $0x2b0] sm:$0xff]   ;;  %v6000_v6 = vld [vmem:[%s5586_s14 + $0x38] sm:$0x7] }
  0x7f   : > { %3485 = vmatmul.mubr.bf16.vlgmr.msra.gmra.mrb[8].mxu0 %v741_v11  ;;  %v743_v21 = vcombine.low %v5875_v30, %v724_v53  ;;  %v871_v27 = vrot.slane %v870_v18, 2  ;;  %v5974_v23 = vcombine.low %v5843_v47, %v827_v26  ;;  %v5129_v47 = vld [vmem:[#allocation3 + $0x220] sm:$0xff]   ;;  %v5135_v63 = vld [vmem:[#allocation3 + $0x2a8] sm:$0xff]   ;;  %v5997_v17 = vld [vmem:[%s5586_s14 + $0x34] sm:$0x7] }
  0x80   : > { %4674 = vmatpush3.bf16.msra.mxu0 %v5112_v13  ;;  %3492 = vmatprep.mubr.bf16.mxu0 %v5954_v44  ;;  %v5130_v11 = vld [vmem:[#allocation3 + $0x2e0] sm:$0xff]   ;;  %v5141_v13 = vld [vmem:[#allocation3 + $0x238] sm:$0xff]  }
  0x81   : > { %4675 = vmatprep.subr.bf16.mxu0 %v5115_v42  ;;  %v757_v56 = vrot.slane %v743_v21, %v5588_v34  ;;  %v876_v29 = vsel %vm5663_vm9, %v871_v27, %v875_v31  ;;  %v285_v42 = vld [vmem:[%s5586_s14 + $0x30] sm:$0x7]  ;;  %v6013_v31 = vrot.slane %v6000_v6, %v5588_v34  ;;  %v5145_v15 = vld [vmem:[#allocation3 + $0x300] sm:$0xff]  }
  0x82   : > { %3534 = vmatmul.mubr.bf16.vlgmr.msra.gmra.mrb[8].mxu1 %v819_v5  ;;  %v886_v30 = vcombine.low %v724_v53, %v876_v29  ;;  %v906_v5 = vsel %vm5710_vm13, %v4304_v62, %v905_v46  ;;  %v5144_v53 = vld [vmem:[#allocation3 + $0x340] sm:$0xff]   ;;  %v933_v18 = vcombine.low %v285_v42, %v5997_v17 }
  0x83   : > { %4702 = vmatpush3.bf16.msra.mxu1 %v5114_v58  ;;  %v5969_v22 = vcombine.low %v750_v20, %v757_v56  ;;  %v916_v0 = vcombine.low %v5934_v25, %v906_v5  ;;  %v5142_v58 = vld [vmem:[#allocation3 + $0x2f8] sm:$0xff]   ;;  %v5146_v27 = vld [vmem:[#allocation3 + $0x3c0] sm:$0xff]   ;;  %v6026_v26 = vcombine.high %v6013_v31, %v6013_v31 }
  0x84   : > { %4703 = vmatprep.subr.bf16.mxu1 %v5117_v43  ;;  %4676 = vmatpush3.bf16.msra.mxu0 %v5116_v40  ;;  %v893_v41 = vrot.slane %v886_v30, %v5588_v34  ;;  %v6003_v40 = vld [vmem:[%s5586_s14 + $0x3c] sm:$0x7]  ;;  %v959_v43 = vrot.slane %v285_v42, %v5588_v34  ;;  %v941_v56 = vrot.slane %v933_v18, %v5588_v34  ;;  %v5156_v18 = vld [vmem:[#allocation3 + $0x3d0] sm:$0xff]  }
  0x85   : > { %4677 = vmatprep.subr.bf16.mxu0 %v5119_v36  ;;  %v934_v25 = vcombine.low %v6000_v6, %v6003_v40  ;;  %v923_v21 = vrot.slane %v916_v0, %v5588_v34 }
  0x86   : > { %v5978_v60 = vcombine.low %v5895_v52, %v893_v41  ;;  %v902_v52 = vsel %vm5710_vm13, %v4303_v1, %v901_v50  ;;  %v960_v20 = vcombine.high %v959_v43, %v959_v43  ;;  %v4305_v36 = vrot.slane %v959_v43, 9 }
  0x87   : > { %4704 = vmatpush3.bf16.msra.mxu1 %v5118_v16  ;;  %3493 = vmatmul.mubr.bf16.gmra.mrb[12].mxu0 %v5969_v22  ;;  %v907_v57 = vcombine.low %v5743_v45, %v902_v52  ;;  %v5140_v45 = vld [vmem:[#allocation3 + $0x278] sm:$0xff]   ;;  %v6017_v16 = vrot.slane %v6003_v40, %v5588_v34  ;;  %v4307_v41 = vrot.slane %v6013_v31, 9  ;;  %v986_v52 = vshrl.u32 %v959_v43, 16 }
  0x88   : > { %4705 = vmatprep.subr.bf16.mxu1 %v5122_v35  ;;  %4678 = vmatpush3.bf16.msra.mxu0 %v5120_v48  ;;  %v6022_v48 = vrot.slane %v934_v25, %v5588_v34  ;;  %v5147_v35 = vld [vmem:[#allocation3 + $0x380] sm:$0xff]   ;;  %v6057_v5 = vcombine.low %v5913_v24, %v923_v21 }
  0x89   : > { %3582 = vmatprep.mubr.bf16.mxu0 %v5863_v33  ;;  %4679 = vmatprep.subr.bf16.mxu0 %v5124_v39  ;;  %v5132_v33 = vld [vmem:[#allocation3 + $0x268] sm:$0xff]   ;;  %v914_v37 = vrot.slane %v907_v57, %v5588_v34  ;;  %v6030_v30 = vcombine.high %v6017_v16, %v6017_v16  ;;  %v4308_v50 = vrot.slane %v6017_v16, 9  ;;  %v1028_v21 = vshrl.u32 %v6017_v16, 16 }
  0x8a   : > { %3541 = vmatprep.mubr.bf16.mxu1 %v5978_v60 }
  0x8b   : > { %4706 = vmatpush3.bf16.msra.mxu1 %v5123_v38  ;;  %v915_v14 = vcombine.low %v5751_v19, %v914_v37  ;;  %v967_v19 = vrot.slane %v5997_v17, %v5588_v34  ;;  %v1063_v38 = vrot.slane %v960_v20, 7  ;;  %v5154_v37 = vld [vmem:[#allocation3 + $0x350] sm:$0xff]  }
  0x8c   : > { %3542 = vmatmul.mubr.bf16.gmra.mrb[12].mxu1 %v5974_v23  ;;  %4707 = vmatprep.subr.bf16.mxu1 %v5126_v55  ;;  %v6034_v55 = vcombine.low %v941_v56, %v6022_v48 }
  0x8d   : > { %4680 = vmatpush3.bf16.msra.mxu0 %v5125_v54  ;;  %3631 = vmatprep.mubr.bf16.mxu1 %v5930_v32  ;;  %v5137_v32 = vld [vmem:[#allocation3 + $0x230] sm:$0xff]   ;;  %v968_v29 = vcombine.high %v967_v19, %v967_v19  ;;  %v4306_v39 = vrot.slane %v967_v19, 9  ;;  %v5148_v54 = vld [vmem:[#allocation3 + $0x348] sm:$0xff]   ;;  %v1000_v46 = vshrl.u32 %v967_v19, 16 }
  0x8e   : > { %4681 = vmatprep.subr.bf16.mxu0 %v5128_v51  ;;  %v5149_v51 = vld [vmem:[#allocation3 + $0x308] sm:$0xff]  }
  0x8f   : > { %4708 = vmatpush3.bf16.msra.mxu1 %v5127_v2  ;;  %v1067_v1 = vrot.slane %v968_v29, 7  ;;  %v1071_v2 = vrot.slane %v6026_v26, 7 }
  0x90   : > { %4709 = vmatprep.subr.bf16.mxu1 %v5130_v11  ;;  %v1064_v11 = vsel %vm5710_vm13, %v4305_v36, %v1063_v38  ;;  %v1037_v38 = vshll.u32 %v6030_v30, 16 }
  0x91   : > { %4682 = vmatpush3.bf16.msra.mxu0 %v5129_v47  ;;  %v5150_v47 = vld [vmem:[#allocation3 + $0x3c8] sm:$0xff]   ;;  %v6047_v62 = vsel %vm5710_vm13, %v4307_v41, %v1071_v2  ;;  %v5160_v41 = vld [vmem:[#allocation3 + $0x3d8] sm:$0xff]  }
  0x92   : > { %4683 = vmatprep.subr.bf16.mxu0 %v5132_v33  ;;  %v989_v33 = vshll.u32 %v959_v43, 16  ;;  %v1017_v43 = vshll.u32 %v6013_v31, 16 }
  0x93   : > { %4710 = vmatpush3.bf16.msra.mxu1 %v5131_v7  ;;  %v1075_v7 = vrot.slane %v6030_v30, 7 }
  0x94   : > { %4711 = vmatprep.subr.bf16.mxu1 %v5134_v8  ;;  %v995_v8 = vshll.u32 %v960_v20, 16  ;;  %v1019_v56 = vrot.slane %v1017_v43, 7  ;;  %v5173_v43 = vld [vmem:[#allocation3 + $0x3b0] sm:$0xff]  }
  0x95   : > { %4684 = vmatpush3.bf16.msra.mxu0 %v5133_v28  ;;  %v6043_v28 = vsel %vm5710_vm13, %v4306_v39, %v1067_v1  ;;  %v6052_v57 = vsel %vm5710_vm13, %v4308_v50, %v1075_v7  ;;  %v5159_v39 = vld [vmem:[#allocation3 + $0x318] sm:$0xff]  }
  0x96   : > { %4685 = vmatprep.subr.bf16.mxu0 %v5136_v3  ;;  %v988_v3 = vrot.slane %v986_v52, 6  ;;  %v1039_v52 = vrot.slane %v1037_v38, 7 }
  0x97   : > { %4712 = vmatpush3.bf16.msra.mxu1 %v5135_v63  ;;  %v1077_v63 = vcombine.low %v1064_v11, %v6043_v28  ;;  %v5162_v11 = vld [vmem:[#allocation3 + $0x360] sm:$0xff]  }
  0x98   : > { %4713 = vmatprep.subr.bf16.mxu1 %v5138_v10  ;;  %v5153_v10 = vld [vmem:[#allocation3 + $0x388] sm:$0xff]  }
  0x99   : > { %4686 = vmatpush3.bf16.msra.mxu0 %v5137_v32  ;;  %v991_v32 = vrot.slane %v989_v33, 7  ;;  %v1085_v0 = vrot.slane %v1077_v63, %v5588_v34  ;;  %v5163_v33 = vld [vmem:[#allocation3 + $0x320] sm:$0xff]  }
  0x9a   : > { %4687 = vmatprep.subr.bf16.mxu0 %v5140_v45  ;;  %v1002_v45 = vrot.slane %v1000_v46, 6  ;;  %v5164_v46 = vld [vmem:[#allocation3 + $0x3e0] sm:$0xff]  }
  0x9b   : > { %4714 = vmatpush3.bf16.msra.mxu1 %v5139_v9  ;;  %v1078_v9 = vcombine.low %v6047_v62, %v6052_v57  ;;  %v992_v42 = vor.u32 %v991_v32, %v988_v3  ;;  %v5165_v32 = vld [vmem:[#allocation3 + $0x3a0] sm:$0xff]  }
  0x9c   : > { %4715 = vmatprep.subr.bf16.mxu1 %v5142_v58  ;;  %v5155_v58 = vld [vmem:[#allocation3 + $0x310] sm:$0xff]  }
  0x9d   : > { %4688 = vmatpush3.bf16.msra.mxu0 %v5141_v13  ;;  %v1003_v13 = vshll.u32 %v967_v19, 16  ;;  %v993_v25 = vrot.slane %v992_v42, 2  ;;  %v997_v19 = vrot.slane %v995_v8, 7  ;;  %v5170_v42 = vld [vmem:[#allocation3 + $0x370] sm:$0xff]  }
  0x9e   : > { %4729 = vmatprep.subr.bf16.mxu0 %v5144_v53  ;;  %v1023_v53 = vshll.u32 %v6026_v26, 16  ;;  %v1031_v26 = vshll.u32 %v6017_v16, 16 }
  0x9f   : > { %4716 = vmatpush3.bf16.msra.mxu1 %v5143_v4  ;;  %v1014_v4 = vshrl.u32 %v6013_v31, 16  ;;  %v1005_v24 = vrot.slane %v1003_v13, 7  ;;  %v1030_v31 = vrot.slane %v1028_v21, 6  ;;  %v998_v50 = vsel %vm5663_vm9, %v993_v25, %v997_v19  ;;  %v5168_v13 = vld [vmem:[#allocation3 + $0x3e8] sm:$0xff]   ;;  %v5176_v25 = vld [vmem:[#allocation3 + $0x3f8] sm:$0xff]   ;;  %v5179_v21 = vld [vmem:[#allocation3 + $0x400] sm:$0xff]  }
  0xa0   : > { %3583 = vmatmul.mubr.bf16.vlgmr.msra.gmra.mrb[16].mxu0 %v915_v14  ;;  %4757 = vmatprep.subr.bf16.mxu1 %v5146_v27  ;;  %v1009_v14 = vshll.u32 %v968_v29, 16  ;;  %v5157_v29 = vld [vmem:[#allocation3 + $0x390] sm:$0xff]   ;;  %v1025_v2 = vrot.slane %v1023_v53, 7  ;;  %v5174_v53 = vld [vmem:[#allocation3 + $0x378] sm:$0xff]  }
  0xa1   : > { %4730 = vmatpush3.bf16.msra.mxu0 %v5145_v15  ;;  %3590 = vmatprep.mubr.bf16.mxu0 %v6034_v55  ;;  %v1016_v15 = vrot.slane %v1014_v4, 6  ;;  %v1006_v36 = vor.u32 %v1005_v24, %v1002_v45  ;;  %v5172_v24 = vld [vmem:[#allocation3 + $0x3f0] sm:$0xff]   ;;  %v5177_v19 = vld [vmem:[#allocation3 + $0x3b8] sm:$0xff]  }
  0xa2   : > { %3632 = vmatmul.mubr.bf16.vlgmr.msra.gmra.mrb[16].mxu1 %v5904_v49  ;;  %4731 = vmatprep.subr.bf16.mxu0 %v5148_v54  ;;  %v6064_v49 = vrot.slane %v1078_v9, %v5588_v34  ;;  %v1011_v27 = vrot.slane %v1009_v14, 7  ;;  %v5171_v14 = vld [vmem:[#allocation3 + $0x330] sm:$0xff]  }
  0xa3   : > { %4758 = vmatpush3.bf16.msra.mxu1 %v5147_v35  ;;  %v5158_v35 = vld [vmem:[#allocation3 + $0x358] sm:$0xff]   ;;  %v1007_v54 = vrot.slane %v1006_v36, 2  ;;  %v1020_v1 = vor.u32 %v1019_v56, %v1016_v15  ;;  %v5178_v15 = vld [vmem:[#allocation3 + $0x440] sm:$0xff]  }
  0xa4   : > { %4759 = vmatprep.subr.bf16.mxu1 %v5150_v47  ;;  %v6070_v20 = vcombine.low %v1085_v0, %v6064_v49  ;;  %v5161_v47 = vld [vmem:[#allocation3 + $0x398] sm:$0xff]   ;;  %v5169_v0 = vld [vmem:[#allocation3 + $0x3a8] sm:$0xff]   ;;  %v5180_v36 = vld [vmem:[#allocation3 + $0x4c0] sm:$0xff]  }
  0xa5   : > { %4732 = vmatpush3.bf16.msra.mxu0 %v5149_v51  ;;  %v1033_v51 = vrot.slane %v1031_v26, 7  ;;  %v6080_v16 = vsel %vm5663_vm9, %v1007_v54, %v1011_v27  ;;  %v1021_v30 = vrot.slane %v1020_v1, 2  ;;  %v5182_v27 = vld [vmem:[#allocation3 + $0x448] sm:$0xff]   ;;  %v289_v56 = vld [vmem:[%s5586_s14 + $0x40] sm:$0x7]  ;;  %v5188_v1 = vld [vmem:[#allocation3 + $0x450] sm:$0xff]  }
  0xa6   : > { %4733 = vmatprep.subr.bf16.mxu0 %v5154_v37  ;;  %3639 = vmatprep.mubr.bf16.mxu1 %v6070_v20  ;;  %v1041_v8 = vcombine.low %v998_v50, %v6080_v16  ;;  %v5167_v37 = vld [vmem:[#allocation3 + $0x328] sm:$0xff]  }
  0xa7   : > { %4760 = vmatpush3.bf16.msra.mxu1 %v5153_v10  ;;  %v1034_v7 = vor.u32 %v1033_v51, %v1030_v31  ;;  %v6086_v63 = vsel %vm5663_vm9, %v1021_v30, %v1025_v2  ;;  %v5166_v10 = vld [vmem:[#allocation3 + $0x368] sm:$0xff]   ;;  %v290_v31 = vld [vmem:[%s5586_s14 + $0x44] sm:$0x7] }
  0xa8   : > { %3591 = vmatmul.mubr.bf16.gmra.mrb[20].mxu0 %v6057_v5  ;;  %4761 = vmatprep.subr.bf16.mxu1 %v5156_v18  ;;  %v1049_v45 = vrot.slane %v1041_v8, %v5588_v34  ;;  %v5175_v18 = vld [vmem:[#allocation3 + $0x338] sm:$0xff]   ;;  %v5183_v26 = vld [vmem:[#allocation3 + $0x408] sm:$0xff]   ;;  %v1185_v2 = vcombine.low %v289_v56, %v290_v31 }
  0xa9   : > { %4734 = vmatpush3.bf16.msra.mxu0 %v5155_v58  ;;  %3680 = vmatprep.mubr.bf16.mxu0 %v5969_v22  ;;  %v1035_v3 = vrot.slane %v1034_v7, 2  ;;  %v5185_v54 = vld [vmem:[#allocation3 + $0x488] sm:$0xff]  }
  0xaa   : > { %4735 = vmatprep.subr.bf16.mxu0 %v5158_v35  ;;  %v1124_v35 = vrot.slane %v289_v56, %v5588_v34  ;;  %v1192_v7 = vrot.slane %v1185_v2, %v5588_v34  ;;  %v5207_v2 = vld [vmem:[#allocation3 + $0x4f0] sm:$0xff]  }
  0xab   : > { %4762 = vmatpush3.bf16.msra.mxu1 %v5157_v29  ;;  %v6090_v22 = vsel %vm5663_vm9, %v1035_v3, %v1039_v52  ;;  %v5181_v29 = vld [vmem:[#allocation3 + $0x480] sm:$0xff]   ;;  %v1099_v3 = vcombine.low %v6003_v40, %v289_v56  ;;  %v5192_v40 = vld [vmem:[#allocation3 + $0x490] sm:$0xff]  }
  0xac   : > { %4763 = vmatprep.subr.bf16.mxu1 %v5160_v41  ;;  %v1042_v9 = vcombine.low %v6086_v63, %v6090_v22  ;;  %v1125_v38 = vcombine.high %v1124_v35, %v1124_v35  ;;  %v1130_v41 = vshll.u32 %v1124_v35, 16  ;;  %v4309_v50 = vrot.slane %v1124_v35, 9 }
  0xad   : > { %4736 = vmatpush3.bf16.msra.mxu0 %v5159_v39  ;;  %v1127_v39 = vshrl.u32 %v1124_v35, 16  ;;  %v5201_v35 = vld [vmem:[#allocation3 + $0x468] sm:$0xff]  }
  0xae   : > { %4737 = vmatprep.subr.bf16.mxu0 %v5162_v11  ;;  %v6096_v58 = vrot.slane %v1042_v9, %v5588_v34  ;;  %v1136_v30 = vshll.u32 %v1125_v38, 16  ;;  %v1164_v11 = vcombine.low %v6043_v28, %v6047_v62  ;;  %v1162_v52 = vrot.slane %v1125_v38, 7 }
  0xaf   : > { %4764 = vmatpush3.bf16.msra.mxu1 %v5161_v47  ;;  %v1129_v51 = vrot.slane %v1127_v39, 6  ;;  %v1132_v47 = vrot.slane %v1130_v41, 7  ;;  %v6117_v28 = vcombine.low %v6022_v48, %v1192_v7  ;;  %v6120_v62 = vrot.slane %v290_v31, %v5588_v34  ;;  %v5195_v48 = vld [vmem:[#allocation3 + $0x4d8] sm:$0xff]   ;;  %v5203_v31 = vld [vmem:[#allocation3 + $0x4e8] sm:$0xff]  }
  0xb0   : > { %4765 = vmatprep.subr.bf16.mxu1 %v5164_v46  ;;  %v6099_v4 = vcombine.low %v1049_v45, %v6096_v58  ;;  %v1098_v46 = vcombine.low %v5997_v17, %v6000_v6  ;;  %v1172_v6 = vrot.slane %v1164_v11, %v5588_v34  ;;  %v1113_v45 = vrot.slane %v1099_v3, %v5588_v34  ;;  %v5202_v39 = vld [vmem:[#allocation3 + $0x428] sm:$0xff]   ;;  %v5211_v11 = vld [vmem:[#allocation3 + $0x4f8] sm:$0xff]  }
  0xb1   : > { %4738 = vmatpush3.bf16.msra.mxu0 %v5163_v33  ;;  %v5191_v33 = vld [vmem:[#allocation3 + $0x4d0] sm:$0xff]   ;;  %v1133_v8 = vor.u32 %v1132_v47, %v1129_v51 }
  0xb2   : > { %4739 = vmatprep.subr.bf16.mxu0 %v5166_v10  ;;  %3640 = vmatmul.mubr.bf16.gmra.mrb[20].mxu1 %v6099_v4  ;;  %v1140_v10 = vcombine.low %v6080_v16, %v6086_v63  ;;  %v1106_v63 = vrot.slane %v1098_v46, %v5588_v34  ;;  %v5206_v51 = vld [vmem:[#allocation3 + $0x430] sm:$0xff]   ;;  %v5215_v46 = vld [vmem:[#allocation3 + $0x5c0] sm:$0xff]  }
  0xb3   : > { %4766 = vmatpush3.bf16.msra.mxu1 %v5165_v32  ;;  %3729 = vmatprep.mubr.bf16.mxu1 %v5974_v23  ;;  %v5184_v23 = vld [vmem:[#allocation3 + $0x4c8] sm:$0xff]   ;;  %v5193_v32 = vld [vmem:[#allocation3 + $0x458] sm:$0xff]   ;;  %v1134_v9 = vrot.slane %v1133_v8, 2  ;;  %v5213_v8 = vld [vmem:[#allocation3 + $0x540] sm:$0xff]  }
  0xb4   : > { %4767 = vmatprep.subr.bf16.mxu1 %v5168_v13 }
  0xb5   : > { %4740 = vmatpush3.bf16.msra.mxu0 %v5167_v37  ;;  %v6124_v37 = vsel %vm5710_vm13, %v4309_v50, %v1162_v52  ;;  %v5210_v52 = vld [vmem:[#allocation3 + $0x438] sm:$0xff]  }
  0xb6   : > { %4741 = vmatprep.subr.bf16.mxu0 %v5170_v42  ;;  %v1165_v17 = vcombine.low %v6052_v57, %v6124_v37  ;;  %v1148_v42 = vrot.slane %v1140_v10, %v5588_v34  ;;  %v5216_v10 = vld [vmem:[#allocation3 + $0x580] sm:$0xff]  }
  0xb7   : > { %4768 = vmatpush3.bf16.msra.mxu1 %v5169_v0  ;;  %v5194_v0 = vld [vmem:[#allocation3 + $0x418] sm:$0xff]  }
  0xb8   : > { %4769 = vmatprep.subr.bf16.mxu1 %v5172_v24  ;;  %v1179_v13 = vrot.slane %v1165_v17, %v5588_v34  ;;  %v1206_v24 = vshrl.u32 %v6120_v62, 16  ;;  %v5219_v17 = vld [vmem:[#allocation3 + $0x5c8] sm:$0xff]  }
  0xb9   : > { %4742 = vmatpush3.bf16.msra.mxu0 %v5171_v14  ;;  %v5197_v14 = vld [vmem:[#allocation3 + $0x460] sm:$0xff]  }
  0xba   : > { %4743 = vmatprep.subr.bf16.mxu0 %v5174_v53  ;;  %v5196_v53 = vld [vmem:[#allocation3 + $0x498] sm:$0xff]  }
  0xbb   : > { %4770 = vmatpush3.bf16.msra.mxu1 %v5173_v43  ;;  %v6141_v43 = vcombine.low %v1172_v6, %v1179_v13 }
  0xbc   : > { %4771 = vmatprep.subr.bf16.mxu1 %v5176_v25  ;;  %v1209_v25 = vshll.u32 %v6120_v62, 16 }
  0xbd   : > { %4744 = vmatpush3.bf16.msra.mxu0 %v5175_v18  ;;  %v1204_v18 = vcombine.high %v6120_v62, %v6120_v62 }
  0xbe   : > { %4785 = vmatprep.subr.bf16.mxu0 %v5178_v15  ;;  %v5199_v15 = vld [vmem:[#allocation3 + $0x4e0] sm:$0xff]  }
  0xbf   : > { %4772 = vmatpush3.bf16.msra.mxu1 %v5177_v19  ;;  %v1233_v41 = vrot.slane %v1204_v18, 7 }
  0xc0   : > { %3681 = vmatmul.mubr.bf16.vlgmr.msra.gmra.mrb[24].mxu0 %v5877_v61  ;;  %4813 = vmatprep.subr.bf16.mxu1 %v5180_v36  ;;  %v5190_v61 = vld [vmem:[#allocation3 + $0x410] sm:$0xff]   ;;  %v5198_v36 = vld [vmem:[#allocation3 + $0x420] sm:$0xff]  }
  0xc1   : > { %4786 = vmatpush3.bf16.msra.mxu0 %v5179_v21  ;;  %v6147_v21 = vcombine.low %v1106_v63, %v1113_v45  ;;  %v6176_v63 = vld [vmem:[%s5586_s14 + $0x50] sm:$0x7]  ;;  %v6180_v45 = vld [vmem:[%s5586_s14 + $0x54] sm:$0x7] }
  0xc2   : > { %3730 = vmatmul.mubr.bf16.vlgmr.msra.gmra.mrb[24].mxu1 %v5954_v44  ;;  %4787 = vmatprep.subr.bf16.mxu0 %v5182_v27  ;;  %v1138_v44 = vrot.slane %v1136_v30, 7  ;;  %v1211_v27 = vrot.slane %v1209_v25, 7  ;;  %v5208_v30 = vld [vmem:[#allocation3 + $0x4b0] sm:$0xff]  }
  0xc3   : > { %4814 = vmatpush3.bf16.msra.mxu1 %v5181_v29  ;;  %3737 = vmatprep.mubr.bf16.mxu1 %v6117_v28  ;;  %v5200_v29 = vld [vmem:[#allocation3 + $0x4a0] sm:$0xff]  }
  0xc4   : > { %4815 = vmatprep.subr.bf16.mxu1 %v5184_v23  ;;  %v6132_v16 = vsel %vm5663_vm9, %v1134_v9, %v1138_v44  ;;  %v1215_v23 = vshll.u32 %v1204_v18, 16  ;;  %v5218_v9 = vld [vmem:[#allocation3 + $0x508] sm:$0xff]  }
  0xc5   : > { %4788 = vmatpush3.bf16.msra.mxu0 %v5183_v26  ;;  %v1141_v57 = vcombine.low %v6090_v22, %v6132_v16  ;;  %v1208_v22 = vrot.slane %v1206_v24, 6  ;;  %v4310_v26 = vrot.slane %v6120_v62, 9  ;;  %v5217_v62 = vld [vmem:[#allocation3 + $0x548] sm:$0xff]  }
  0xc6   : > { %4789 = vmatprep.subr.bf16.mxu0 %v5188_v1  ;;  %v1217_v1 = vrot.slane %v1215_v23, 7 }
  0xc7   : > { %4816 = vmatpush3.bf16.msra.mxu1 %v5185_v54  ;;  %v1155_v19 = vrot.slane %v1141_v57, %v5588_v34  ;;  %v1212_v38 = vor.u32 %v1211_v27, %v1208_v22  ;;  %v5204_v54 = vld [vmem:[#allocation3 + $0x4a8] sm:$0xff]   ;;  %v1234_v47 = vsel %vm5710_vm13, %v4310_v26, %v1233_v41  ;;  %v6199_v57 = vrot.slane %v6180_v45, %v5588_v34  ;;  %v5222_v22 = vld [vmem:[#allocation3 + $0x510] sm:$0xff]   ;;  %v5227_v41 = vld [vmem:[#allocation3 + $0x558] sm:$0xff]  }
  0xc8   : > { %4817 = vmatprep.subr.bf16.mxu1 %v5191_v33  ;;  %v5212_v33 = vld [vmem:[#allocation3 + $0x4b8] sm:$0xff]  }
  0xc9   : > { %4790 = vmatpush3.bf16.msra.mxu0 %v5190_v61  ;;  %v6150_v56 = vcombine.low %v1148_v42, %v1155_v19  ;;  %v1213_v50 = vrot.slane %v1212_v38, 2  ;;  %v5209_v61 = vld [vmem:[#allocation3 + $0x478] sm:$0xff]   ;;  %v6217_v18 = vcombine.high %v6199_v57, %v6199_v57 }
  0xca   : > { %4791 = vmatprep.subr.bf16.mxu0 %v5193_v32  ;;  %3738 = vmatmul.mubr.bf16.gmra.mrb[28].mxu1 %v6141_v43  ;;  %v5214_v32 = vld [vmem:[#allocation3 + $0x500] sm:$0xff]  }
  0xcb   : > { %4818 = vmatpush3.bf16.msra.mxu1 %v5192_v40  ;;  %3827 = vmatprep.mubr.bf16.mxu1 %v6099_v4  ;;  %v5205_v4 = vld [vmem:[#allocation3 + $0x470] sm:$0xff]   ;;  %v1218_v7 = vsel %vm5663_vm9, %v1213_v50, %v1217_v1  ;;  %v5220_v40 = vld [vmem:[#allocation3 + $0x588] sm:$0xff]  }
  0xcc   : > { %4819 = vmatprep.subr.bf16.mxu1 %v5195_v48  ;;  %3688 = vmatprep.mubr.bf16.mxu0 %v6150_v56  ;;  %v1219_v44 = vcombine.low %v6132_v16, %v1218_v7  ;;  %v6170_v48 = vld [vmem:[%s5586_s14 + $0x48] sm:$0x7]  ;;  %v6173_v16 = vld [vmem:[%s5586_s14 + $0x4c] sm:$0x7]  ;;  %v5229_v7 = vld [vmem:[#allocation3 + $0x5d8] sm:$0xff]  }
  0xcd   : > { %4792 = vmatpush3.bf16.msra.mxu0 %v5194_v0  ;;  %v6184_v13 = vrot.slane %v6170_v48, %v5588_v34 }
  0xce   : > { %4793 = vmatprep.subr.bf16.mxu0 %v5197_v14  ;;  %3689 = vmatmul.mubr.bf16.gmra.mrb[28].mxu0 %v6147_v21 }
  0xcf   : > { %4820 = vmatpush3.bf16.msra.mxu1 %v5196_v53  ;;  %3778 = vmatprep.mubr.bf16.mxu0 %v6057_v5  ;;  %v1235_v5 = vcombine.low %v6124_v37, %v1234_v47  ;;  %v1226_v37 = vrot.slane %v1219_v44, %v5588_v34  ;;  %v6204_v42 = vcombine.high %v6184_v13, %v6184_v13  ;;  %v1304_v24 = vshrl.u32 %v6184_v13, 16  ;;  %v5225_v53 = vld [vmem:[#allocation3 + $0x5d0] sm:$0xff]  }
  0xd0   : > { %4821 = vmatprep.subr.bf16.mxu1 %v5199_v15  ;;  %v1307_v25 = vshll.u32 %v6184_v13, 16 }
  0xd1   : > { %4794 = vmatpush3.bf16.msra.mxu0 %v5198_v36  ;;  %v1242_v3 = vrot.slane %v1235_v5, %v5588_v34  ;;  %v6195_v0 = vcombine.low %v6096_v58, %v1226_v37  ;;  %v1306_v36 = vrot.slane %v1304_v24, 6  ;;  %v1313_v27 = vshll.u32 %v6204_v42, 16  ;;  %v5228_v5 = vld [vmem:[#allocation3 + $0x518] sm:$0xff]   ;;  %v5232_v24 = vld [vmem:[#allocation3 + $0x520] sm:$0xff]  }
  0xd2   : > { %4795 = vmatprep.subr.bf16.mxu0 %v5201_v35  ;;  %v1309_v23 = vrot.slane %v1307_v25, 7  ;;  %v5233_v25 = vld [vmem:[#allocation3 + $0x5e0] sm:$0xff]  }
  0xd3   : > { %4822 = vmatpush3.bf16.msra.mxu1 %v5200_v29  ;;  %v6166_v6 = vcombine.low %v6064_v49, %v1242_v3  ;;  %v6188_v49 = vrot.slane %v6173_v16, %v5588_v34 }
  0xd4   : > { %4823 = vmatprep.subr.bf16.mxu1 %v5203_v31  ;;  %v1310_v50 = vor.u32 %v1309_v23, %v1306_v36  ;;  %v5234_v36 = vld [vmem:[#allocation3 + $0x5a0] sm:$0xff]  }
  0xd5   : > { %4796 = vmatpush3.bf16.msra.mxu0 %v5202_v39  ;;  %v6208_v14 = vcombine.high %v6188_v49, %v6188_v49  ;;  %v1318_v19 = vshrl.u32 %v6188_v49, 16  ;;  %v1321_v15 = vshll.u32 %v6188_v49, 16  ;;  %v5226_v39 = vld [vmem:[#allocation3 + $0x590] sm:$0xff]  }
  0xd6   : > { %4797 = vmatprep.subr.bf16.mxu0 %v5205_v4 }
  0xd7   : > { %4824 = vmatpush3.bf16.msra.mxu1 %v5204_v54  ;;  %v1327_v29 = vshll.u32 %v6208_v14, 16  ;;  %v1320_v31 = vrot.slane %v1318_v19, 6  ;;  %v1323_v26 = vrot.slane %v1321_v15, 7  ;;  %v1315_v54 = vrot.slane %v1313_v27, 7 }
  0xd8   : > { %4825 = vmatprep.subr.bf16.mxu1 %v5207_v2  ;;  %v4311_v19 = vrot.slane %v6184_v13, 9  ;;  %v1381_v27 = vrot.slane %v6204_v42, 7  ;;  %v5236_v13 = vld [vmem:[#allocation3 + $0x528] sm:$0xff]  }
  0xd9   : > { %4798 = vmatpush3.bf16.msra.mxu0 %v5206_v51  ;;  %v1329_v4 = vrot.slane %v1327_v29, 7  ;;  %v1324_v51 = vor.u32 %v1323_v26, %v1320_v31  ;;  %v4312_v31 = vrot.slane %v6188_v49, 9  ;;  %v5237_v42 = vld [vmem:[#allocation3 + $0x5e8] sm:$0xff]  }
  0xda   : > { %4799 = vmatprep.subr.bf16.mxu0 %v5209_v61  ;;  %v1349_v61 = vshll.u32 %v6199_v57, 16 }
  0xdb   : > { %4826 = vmatpush3.bf16.msra.mxu1 %v5208_v30  ;;  %v1346_v30 = vshrl.u32 %v6199_v57, 16 }
  0xdc   : > { %4827 = vmatprep.subr.bf16.mxu1 %v5211_v11  ;;  %v1355_v11 = vshll.u32 %v6217_v18, 16 }
  0xdd   : > { %4800 = vmatpush3.bf16.msra.mxu0 %v5210_v52  ;;  %v1311_v52 = vrot.slane %v1310_v50, 2  ;;  %v1348_v44 = vrot.slane %v1346_v30, 6  ;;  %v5240_v50 = vld [vmem:[#allocation3 + $0x530] sm:$0xff]  }
  0xde   : > { %4841 = vmatprep.subr.bf16.mxu0 %v5213_v8  ;;  %v5242_v30 = vld [vmem:[#allocation3 + $0x5b0] sm:$0xff]  }
  0xdf   : > { %4828 = vmatpush3.bf16.msra.mxu1 %v5212_v33  ;;  %v1325_v33 = vrot.slane %v1324_v51, 2  ;;  %v4314_v51 = vrot.slane %v6199_v57, 9 }
  0xe0   : > { %4869 = vmatprep.subr.bf16.mxu1 %v5215_v46  ;;  %3779 = vmatmul.mubr.bf16.vlgmr.msra.gmra.mrb[32].mxu0 %v5978_v60  ;;  %v6192_v60 = vrot.slane %v6176_v63, %v5588_v34  ;;  %v5230_v46 = vld [vmem:[#allocation3 + $0x598] sm:$0xff]  }
  0xe1   : > { %4842 = vmatpush3.bf16.msra.mxu0 %v5214_v32  ;;  %3786 = vmatprep.mubr.bf16.mxu0 %v6166_v6  ;;  %v1351_v32 = vrot.slane %v1349_v61, 7  ;;  %v5243_v61 = vld [vmem:[#allocation3 + $0x578] sm:$0xff]  }
  0xe2   : > { %3828 = vmatmul.mubr.bf16.vlgmr.msra.gmra.mrb[32].mxu1 %v6034_v55  ;;  %4843 = vmatprep.subr.bf16.mxu0 %v5217_v62  ;;  %v5221_v55 = vld [vmem:[#allocation3 + $0x550] sm:$0xff]   ;;  %v6212_v58 = vcombine.high %v6192_v60, %v6192_v60  ;;  %v1332_v35 = vshrl.u32 %v6192_v60, 16  ;;  %v1335_v38 = vshll.u32 %v6192_v60, 16  ;;  %v6236_v62 = vsel %vm5663_vm9, %v1325_v33, %v1329_v4  ;;  %v5247_v33 = vld [vmem:[#allocation3 + $0x640] sm:$0xff]  }
  0xe3   : > { %4870 = vmatpush3.bf16.msra.mxu1 %v5216_v10  ;;  %v1316_v10 = vsel %vm5663_vm9, %v1311_v52, %v1315_v54  ;;  %v4313_v54 = vrot.slane %v6192_v60, 9  ;;  %v1393_v60 = vrot.slane %v6217_v18, 7  ;;  %v5245_v18 = vld [vmem:[#allocation3 + $0x5f8] sm:$0xff]  }
  0xe4   : > { %4871 = vmatprep.subr.bf16.mxu1 %v5219_v17  ;;  %v1334_v1 = vrot.slane %v1332_v35, 6  ;;  %v1341_v2 = vshll.u32 %v6212_v58, 16  ;;  %v1337_v47 = vrot.slane %v1335_v38, 7  ;;  %v1357_v17 = vrot.slane %v1355_v11, 7  ;;  %v5244_v11 = vld [vmem:[#allocation3 + $0x538] sm:$0xff]  }
  0xe5   : > { %4844 = vmatpush3.bf16.msra.mxu0 %v5218_v9  ;;  %v5231_v9 = vld [vmem:[#allocation3 + $0x560] sm:$0xff]   ;;  %v1389_v49 = vrot.slane %v6212_v58, 7  ;;  %v1382_v58 = vsel %vm5710_vm13, %v4311_v19, %v1381_v27  ;;  %v5246_v52 = vld [vmem:[#allocation3 + $0x5b8] sm:$0xff]  }
  0xe6   : > { %4845 = vmatprep.subr.bf16.mxu0 %v5221_v55  ;;  %v1338_v8 = vor.u32 %v1337_v47, %v1334_v1  ;;  %v1343_v3 = vrot.slane %v1341_v2, 7  ;;  %v1252_v55 = vcombine.low %v6176_v63, %v6180_v45  ;;  %v5239_v1 = vld [vmem:[#allocation3 + $0x570] sm:$0xff]  }
  0xe7   : > { %4872 = vmatpush3.bf16.msra.mxu1 %v5220_v40  ;;  %v1251_v40 = vcombine.low %v6170_v48, %v6173_v16  ;;  %v5235_v48 = vld [vmem:[#allocation3 + $0x568] sm:$0xff]  }
  0xe8   : > { %4873 = vmatprep.subr.bf16.mxu1 %v5225_v53  ;;  %3787 = vmatmul.mubr.bf16.gmra.mrb[36].mxu0 %v6195_v0  ;;  %v1339_v37 = vrot.slane %v1338_v8, 2  ;;  %v1359_v53 = vcombine.low %v1316_v10, %v6236_v62  ;;  %v6255_v23 = vrot.slane %v1252_v55, %v5588_v34  ;;  %v5250_v10 = vld [vmem:[#allocation3 + $0x680] sm:$0xff]  }
  0xe9   : > { %4846 = vmatpush3.bf16.msra.mxu0 %v5222_v22  ;;  %3876 = vmatprep.mubr.bf16.mxu0 %v6147_v21  ;;  %v1352_v21 = vor.u32 %v1351_v32, %v1348_v44  ;;  %v1259_v35 = vrot.slane %v1251_v40, %v5588_v34  ;;  %v5249_v32 = vld [vmem:[#allocation3 + $0x648] sm:$0xff]   ;;  %v5254_v40 = vld [vmem:[#allocation3 + $0x650] sm:$0xff]  }
  0xea   : > { %4847 = vmatprep.subr.bf16.mxu0 %v5227_v41  ;;  %v6246_v15 = vsel %vm5663_vm9, %v1339_v37, %v1343_v3  ;;  %v1367_v38 = vrot.slane %v1359_v53, %v5588_v34  ;;  %v5238_v41 = vld [vmem:[#allocation3 + $0x5a8] sm:$0xff]   ;;  %v1416_v3 = vcombine.low %v6173_v16, %v6176_v63 }
  0xeb   : > { %4874 = vmatpush3.bf16.msra.mxu1 %v5226_v39  ;;  %v1353_v22 = vrot.slane %v1352_v21, 2  ;;  %v1385_v39 = vrot.slane %v6208_v14, 7  ;;  %v1267_v2 = vcombine.low %v1259_v35, %v6255_v23  ;;  %v5241_v14 = vld [vmem:[#allocation3 + $0x5f0] sm:$0xff]   ;;  %v5251_v37 = vld [vmem:[#allocation3 + $0x608] sm:$0xff]  }
  0xec   : > { %4875 = vmatprep.subr.bf16.mxu1 %v5229_v7  ;;  %v6279_v7 = vsel %vm5710_vm13, %v4314_v51, %v1393_v60  ;;  %v1424_v63 = vrot.slane %v1416_v3, %v5588_v34  ;;  %v5256_v35 = vld [vmem:[#allocation3 + $0x610] sm:$0xff]   ;;  %v1458_v51 = vcombine.low %v6236_v62, %v6246_v15  ;;  %v5265_v3 = vld [vmem:[#allocation3 + $0x628] sm:$0xff]  }
  0xed   : > { %4848 = vmatpush3.bf16.msra.mxu0 %v5228_v5  ;;  %v6251_v29 = vsel %vm5663_vm9, %v1353_v22, %v1357_v17  ;;  %v1386_v57 = vsel %vm5710_vm13, %v4312_v31, %v1385_v39  ;;  %v1390_v5 = vsel %vm5710_vm13, %v4313_v54, %v1389_v49  ;;  %v5258_v31 = vld [vmem:[#allocation3 + $0x690] sm:$0xff]   ;;  %v5259_v54 = vld [vmem:[#allocation3 + $0x618] sm:$0xff]  }
  0xee   : > { %4849 = vmatprep.subr.bf16.mxu0 %v5231_v9  ;;  %v1360_v26 = vcombine.low %v6246_v15, %v6251_v29  ;;  %v1395_v8 = vcombine.low %v1382_v58, %v1386_v57  ;;  %v1396_v44 = vcombine.low %v1390_v5, %v6279_v7  ;;  %v6287_v9 = vld [vmem:[%s5586_s14 + $0x58] sm:$0x7]  ;;  %v1482_v19 = vcombine.low %v1386_v57, %v1390_v5  ;;  %v5264_v5 = vld [vmem:[#allocation3 + $0x6a0] sm:$0xff]  }
  0xef   : > { %4876 = vmatpush3.bf16.msra.mxu1 %v5230_v46  ;;  %v5248_v46 = vld [vmem:[#allocation3 + $0x600] sm:$0xff]   ;;  %v1417_v16 = vcombine.low %v6180_v45, %v6287_v9  ;;  %v1442_v17 = vrot.slane %v6287_v9, %v5588_v34  ;;  %v1466_v15 = vrot.slane %v1458_v51, %v5588_v34 }
  0xf0   : > { %4877 = vmatprep.subr.bf16.mxu1 %v5233_v25  ;;  %v6264_v4 = vrot.slane %v1360_v26, %v5588_v34  ;;  %v6291_v21 = vrot.slane %v1396_v44, %v5588_v34  ;;  %v5255_v25 = vld [vmem:[#allocation3 + $0x688] sm:$0xff]   ;;  %v1490_v49 = vrot.slane %v1482_v19, %v5588_v34 }
  0xf1   : > { %4850 = vmatpush3.bf16.msra.mxu0 %v5232_v24  ;;  %v1431_v55 = vrot.slane %v1417_v16, %v5588_v34  ;;  %v1443_v24 = vcombine.high %v1442_v17, %v1442_v17  ;;  %v4315_v53 = vrot.slane %v1442_v17, 9  ;;  %v1445_v45 = vshrl.u32 %v1442_v17, 16 }
  0xf2   : > { %4851 = vmatprep.subr.bf16.mxu0 %v5235_v48  ;;  %v1375_v47 = vcombine.low %v1367_v38, %v6264_v4  ;;  %v1448_v22 = vshll.u32 %v1442_v17, 16 }
  0xf3   : > { %4878 = vmatpush3.bf16.msra.mxu1 %v5234_v36  ;;  %v1432_v36 = vcombine.low %v1424_v63, %v1431_v55  ;;  %v1480_v48 = vrot.slane %v1443_v24, 7  ;;  %v1447_v26 = vrot.slane %v1445_v45, 6  ;;  %v5270_v55 = vld [vmem:[#allocation3 + $0x6b0] sm:$0xff]  }
  0xf4   : > { %4879 = vmatprep.subr.bf16.mxu1 %v5237_v42  ;;  %3835 = vmatprep.mubr.bf16.mxu1 %v1375_v47  ;;  %v1450_v38 = vrot.slane %v1448_v22, 7  ;;  %v5257_v42 = vld [vmem:[#allocation3 + $0x658] sm:$0xff]  }
  0xf5   : > { %4852 = vmatpush3.bf16.msra.mxu0 %v5236_v13  ;;  %3836 = vmatmul.mubr.bf16.gmra.mrb[36].mxu1 %v1267_v2  ;;  %v1454_v13 = vshll.u32 %v1443_v24, 16  ;;  %v6308_v39 = vsel %vm5710_vm13, %v4315_v53, %v1480_v48  ;;  %v5261_v47 = vld [vmem:[#allocation3 + $0x698] sm:$0xff]  }
  0xf6   : > { %4853 = vmatprep.subr.bf16.mxu0 %v5239_v1  ;;  %3925 = vmatprep.mubr.bf16.mxu1 %v6141_v43  ;;  %v1403_v43 = vrot.slane %v1395_v8, %v5588_v34  ;;  %v1483_v1 = vcombine.low %v6279_v7, %v6308_v39  ;;  %v1451_v2 = vor.u32 %v1450_v38, %v1447_v26  ;;  %v5269_v53 = vld [vmem:[#allocation3 + $0x678] sm:$0xff]  }
  0xf7   : > { %4880 = vmatpush3.bf16.msra.mxu1 %v5238_v41  ;;  %v1456_v41 = vrot.slane %v1454_v13, 7 }
  0xf8   : > { %4881 = vmatprep.subr.bf16.mxu1 %v5241_v14  ;;  %v1497_v60 = vrot.slane %v1483_v1, %v5588_v34 }
  0xf9   : > { %4854 = vmatpush3.bf16.msra.mxu0 %v5240_v50 }
  0xfa   : > { %4855 = vmatprep.subr.bf16.mxu0 %v5243_v61  ;;  %v5260_v61 = vld [vmem:[#allocation3 + $0x660] sm:$0xff]  }
  0xfb   : > { %4882 = vmatpush3.bf16.msra.mxu1 %v5242_v30  ;;  %v1452_v30 = vrot.slane %v1451_v2, 2 }
  0xfc   : > { %4883 = vmatprep.subr.bf16.mxu1 %v5245_v18 }
  0xfd   : > { %4856 = vmatpush3.bf16.msra.mxu0 %v5244_v11  ;;  %v1498_v11 = vcombine.low %v1490_v49, %v1497_v60  ;;  %v1457_v57 = vsel %vm5663_vm9, %v1452_v30, %v1456_v41 }
  0xfe   : > { %4897 = vmatprep.subr.bf16.mxu0 %v5247_v33  ;;  %v1459_v62 = vcombine.low %v6251_v29, %v1457_v57  ;;  %v5267_v29 = vld [vmem:[#allocation3 + $0x6a8] sm:$0xff]  }
  0xff   : > { %4884 = vmatpush3.bf16.msra.mxu1 %v5246_v52  ;;  %v5263_v52 = vld [vmem:[#allocation3 + $0x668] sm:$0xff]  }
 0x100   : > { %3877 = vmatmul.mubr.bf16.vlgmr.msra.gmra.mrb[40].mxu0 %v6070_v20  ;;  %v6300_v20 = vld [vmem:[%s5586_s14 + $0x5c] sm:$0x7]  ;;  %4935 = vmatprep.subr.bf16.mxu1 %v5250_v10  ;;  %s4095_s14 = scalar_lea.sflag [#allocation5], %s6341_s17 }
 0x101   : > { %4898 = vmatpush3.bf16.msra.mxu0 %v5248_v46  ;;  %v1521_v27 = vrot.slane %v6300_v20, %v5588_v34  ;;  %3884 = vmatprep.mubr.bf16.mxu0 %v1432_v36  ;;  %v1473_v46 = vrot.slane %v1459_v62, %v5588_v34 }
 0x102   : > { %3926 = vmatmul.mubr.bf16.vlgmr.msra.gmra.mrb[40].mxu1 %v6150_v56  ;;  %4899 = vmatprep.subr.bf16.mxu0 %v5249_v32  ;;  %v1411_v56 = vcombine.low %v1403_v43, %v6291_v21  ;;  %v5266_v43 = vld [vmem:[#allocation3 + $0x670] sm:$0xff]  }
 0x103   : > { %4936 = vmatpush3.bf16.msra.mxu1 %v5250_v10  ;;  %v1522_v50 = vcombine.high %v1521_v27, %v1521_v27  ;;  %v1524_v14 = vshrl.u32 %v1521_v27, 16  ;;  %v1527_v7 = vshll.u32 %v1521_v27, 16  ;;  %3933 = vmatprep.mubr.bf16.mxu1 %v1498_v11  ;;  %v4316_v8 = vrot.slane %v1521_v27, 9 }
 0x104   : > { %4937 = vmatprep.subr.bf16.mxu1 %v5255_v25 }
 0x105   : > { %4900 = vmatpush3.bf16.msra.mxu0 %v5251_v37  ;;  %v1526_v58 = vrot.slane %v1524_v14, 6  ;;  %v1533_v18 = vshll.u32 %v1522_v50, 16  ;;  %v1529_v33 = vrot.slane %v1527_v7, 7  ;;  %v1551_v44 = vrot.slane %v1522_v50, 7 }
 0x106   : > { %4901 = vmatprep.subr.bf16.mxu0 %v5254_v40  ;;  %v1474_v37 = vcombine.low %v1466_v15, %v1473_v46  ;;  %v5268_v40 = vld [vmem:[#allocation3 + $0x630] sm:$0xff]  }
 0x107   : > { %4938 = vmatpush3.bf16.msra.mxu1 %v5255_v25  ;;  %v1530_v32 = vor.u32 %v1529_v33, %v1526_v58  ;;  %v1535_v10 = vrot.slane %v1533_v18, 7  ;;  %v1552_v63 = vsel %vm5710_vm13, %v4316_v8, %v1551_v44 }
 0x108   : > { %3885 = vmatmul.mubr.bf16.gmra.mrb[44].mxu0 %v1411_v56  ;;  %4939 = vmatprep.subr.bf16.mxu1 %v5258_v31  ;;  %v1553_v25 = vcombine.low %v6308_v39, %v1552_v63  ;;  %v5272_v56 = vld [vmem:[#allocation3 + $0x6b8] sm:$0xff]  }
 0x109   : > { %4902 = vmatpush3.bf16.msra.mxu0 %v5256_v35  ;;  %3974 = vmatprep.mubr.bf16.mxu0 %v6195_v0  ;;  %v5262_v0 = vld [vmem:[#allocation3 + $0x620] sm:$0xff]   ;;  %v1531_v16 = vrot.slane %v1530_v32, 2 }
 0x10a   : > { %4903 = vmatprep.subr.bf16.mxu0 %v5257_v42  ;;  %3934 = vmatmul.mubr.bf16.gmra.mrb[44].mxu1 %v1474_v37  ;;  %v1560_v12 = vrot.slane %v1553_v25, %v5588_v34 }
 0x10b   : > { %4940 = vmatpush3.bf16.msra.mxu1 %v5258_v31  ;;  %4951 = vmatprep.mubr.bf16.mxu1 %v6166_v6  ;;  %v1536_v17 = vsel %vm5663_vm9, %v1531_v16, %v1535_v10  ;;  %v1503_v6 = vcombine.low %v6287_v9, %v6300_v20 }
 0x10c   : > { %4941 = vmatprep.subr.bf16.mxu1 %v5261_v47  ;;  %v1537_v24 = vcombine.low %v1457_v57, %v1536_v17  ;;  %v1561_v22 = vcombine.low %v6291_v21, %v1560_v12 }
 0x10d   : > { %4904 = vmatpush3.bf16.msra.mxu0 %v5259_v54  ;;  %v1510_v36 = vrot.slane %v1503_v6, %v5588_v34 }
 0x10e   : > { %4905 = vmatprep.subr.bf16.mxu0 %v5260_v61  ;;  %v1544_v19 = vrot.slane %v1537_v24, %v5588_v34 }
 0x10f   : > { %4942 = vmatpush3.bf16.msra.mxu1 %v5261_v47  ;;  %v1511_v48 = vcombine.low %v6255_v23, %v1510_v36 }
 0x110   : > { %4943 = vmatprep.subr.bf16.mxu1 %v5264_v5  ;;  %v1545_v45 = vcombine.low %v6264_v4, %v1544_v19  ;;  %v4317_v4 = vld [vmem:[%s6478_s2] ss:$0 sm:$0xff] }
 0x111   : > { %4906 = vmatpush3.bf16.msra.mxu0 %v5262_v0 }
 0x112   : > { %4907 = vmatprep.subr.bf16.mxu0 %v5263_v52 }
 0x113   : > { %4944 = vmatpush3.bf16.msra.mxu1 %v5264_v5 }
 0x114   : > { %4945 = vmatprep.subr.bf16.mxu1 %v5267_v29 }
 0x115   : > { %4908 = vmatpush3.bf16.msra.mxu0 %v5265_v3 }
 0x116   : > { %4909 = vmatprep.subr.bf16.mxu0 %v5266_v43 }
 0x117   : > { %4946 = vmatpush3.bf16.msra.mxu1 %v5267_v29 }
 0x118   : > { %4947 = vmatprep.subr.bf16.mxu1 %v5270_v55 }
 0x119   : > { %4910 = vmatpush3.bf16.msra.mxu0 %v5268_v40 }
 0x11a   : > { %4911 = vmatprep.subr.bf16.mxu0 %v5269_v53 }
 0x11b   : > { %4948 = vmatpush3.bf16.msra.mxu1 %v5270_v55 }
 0x11c   : > { %4949 = vmatprep.subr.bf16.mxu1 %v5272_v56 }
 0x11d   : > { %4912 = vmatpush3.bf16.msra.mxu0 %v5271_v59 }
 0x11f   : > { %4950 = vmatpush3.bf16.msra.mxu1 %v5272_v56 }
 0x120   : > { %3975 = vmatmul.mubr.bf16.vlgmr.msra.gmra.mrb[48].mxu0 %v6117_v28 }
 0x121   : > { %3982 = vmatprep.mubr.bf16.mxu0 %v1545_v45 }
 0x122   : > { %4952 = vmatmul.mubr.bf16.vlgmr.msra.gmra.mrb[48].mxu1 %v1561_v22 }
 0x128   : > { %3983 = vmatmul.mubr.bf16.gmra.mrb[52].mxu0 %v1511_v48 }
 0x132   : > { %v4577_v27 = vpop.f32.mrb[0].mxu0  ;;  %v4605_v28 = vpop.f32.mrb[0].mxu1 }
 0x133   : > { %v4578_v35 = vpop.f32.mrb[1].mxu0  ;;  %v4606_v26 = vpop.f32.mrb[1].mxu1 }
 0x134   : > { %v4579_v13 = vadd.f32 %v4578_v35, %v4577_v27  ;;  %v4580_v9 = vpop.f32.mrb[2].mxu0  ;;  %v4607_v34 = vadd.f32 %v4606_v26, %v4605_v28  ;;  %v4608_v42 = vpop.f32.mrb[2].mxu1 }
 0x135   : > { %v4581_v20 = vpop.f32.mrb[3].mxu0  ;;  %v4609_v39 = vpop.f32.mrb[3].mxu1 }
 0x136   : > { %v4582_v21 = vadd.f32 %v4581_v20, %v4580_v9  ;;  %v3389_v31 = vadd.f32 %v4579_v13, %v4317_v4  ;;  %v4610_v23 = vadd.f32 %v4609_v39, %v4608_v42 }
 0x138   : > { %v3392_v38 = vadd.f32 %v4582_v21, %v4317_v4  ;;  %v3438_v41 = vadd.f32 %v4607_v34, %v3389_v31 }
 0x13a   : > { %v3441_v54 = vadd.f32 %v4610_v23, %v3392_v38 }
 0x14a   : > { %v4583_v1 = vpop.f32.mrb[4].mxu0 }
 0x14b   : > { %v4584_v49 = vpop.f32.mrb[5].mxu0 }
 0x14c   : > { %v4585_v2 = vadd.f32 %v4584_v49, %v4583_v1  ;;  %v4586_v50 = vpop.f32.mrb[6].mxu0 }
 0x14d   : > { %v4611_v51 = vpop.f32.mrb[4].mxu1  ;;  %v4587_v47 = vpop.f32.mrb[7].mxu0 }
 0x14e   : > { %v4612_v14 = vpop.f32.mrb[5].mxu1  ;;  %v3397_v60 = vadd.f32 %v4585_v2, %v4317_v4  ;;  %v4588_v30 = vadd.f32 %v4587_v47, %v4586_v50 }
 0x14f   : > { %v4613_v61 = vadd.f32 %v4612_v14, %v4611_v51  ;;  %v4614_v58 = vpop.f32.mrb[6].mxu1 }
 0x150   : > { %v4615_v11 = vpop.f32.mrb[7].mxu1  ;;  %v3400_v57 = vadd.f32 %v4588_v30, %v4317_v4 }
 0x151   : > { %v3446_v5 = vadd.f32 %v4613_v61, %v3397_v60  ;;  %v4616_v7 = vadd.f32 %v4615_v11, %v4614_v58 }
 0x152   : > { %v4633_v15 = vpop.f32.mrb[8].mxu0 }
 0x153   : > { %v3449_v62 = vadd.f32 %v4616_v7, %v3400_v57  ;;  %v4634_v0 = vpop.f32.mrb[9].mxu0 }
 0x154   : > { %v4635_v18 = vadd.f32 %v4634_v0, %v4633_v15  ;;  %v4636_v52 = vpop.f32.mrb[10].mxu0 }
 0x155   : > { %v4661_v33 = vpop.f32.mrb[8].mxu1  ;;  %v4637_v8 = vpop.f32.mrb[11].mxu0 }
 0x156   : > { %v4662_v44 = vpop.f32.mrb[9].mxu1  ;;  %v3487_v46 = vadd.f32 %v4635_v18, %v3438_v41  ;;  %v4638_v3 = vadd.f32 %v4637_v8, %v4636_v52  ;;  %v5450_v8 = vmov 0.0  }
 0x157   : > { %v4663_v32 = vadd.f32 %v4662_v44, %v4661_v33  ;;  %v4664_v10 = vpop.f32.mrb[10].mxu1  ;;  %4064 = vst [vmem:[%s6344_s27] sm:$0x1] %v5450_v8  ;;  %4065 = vst [vmem:[%s6348_s29] sm:$0x1] %v5450_v8 }
 0x158   : > { %v4665_v37 = vpop.f32.mrb[11].mxu1  ;;  %v3490_v29 = vadd.f32 %v4638_v3, %v3441_v54 }
 0x159   : > { %v3536_v43 = vadd.f32 %v4663_v32, %v3487_v46  ;;  %v4666_v16 = vadd.f32 %v4665_v37, %v4664_v10 }
 0x15a   : > { %v4639_v17 = vpop.f32.mrb[12].mxu0 }
 0x15b   : > { %v3539_v63 = vadd.f32 %v4666_v16, %v3490_v29  ;;  %v4640_v40 = vpop.f32.mrb[13].mxu0 }
 0x15c   : > { %v4641_v55 = vadd.f32 %v4640_v40, %v4639_v17  ;;  %v4642_v24 = vpop.f32.mrb[14].mxu0 }
 0x15d   : > { %v4643_v53 = vpop.f32.mrb[15].mxu0 }
 0x15e   : > { %v3495_v25 = vadd.f32 %v4641_v55, %v3446_v5  ;;  %v4644_v56 = vadd.f32 %v4643_v53, %v4642_v24 }
 0x15f   : > { %v4667_v59 = vpop.f32.mrb[12].mxu1 }
 0x160   : > { %v4668_v19 = vpop.f32.mrb[13].mxu1  ;;  %v3498_v12 = vadd.f32 %v4644_v56, %v3449_v62 }
 0x161   : > { %v4669_v6 = vadd.f32 %v4668_v19, %v4667_v59  ;;  %v4670_v45 = vpop.f32.mrb[14].mxu1 }
 0x162   : > { %v4671_v22 = vpop.f32.mrb[15].mxu1 }
 0x163   : > { %v3544_v36 = vadd.f32 %v4669_v6, %v3495_v25  ;;  %v4672_v48 = vadd.f32 %v4671_v22, %v4670_v45 }
 0x165   : > { %v3547_v27 = vadd.f32 %v4672_v48, %v3498_v12 }
 0x173   : > { %v4689_v35 = vpop.f32.mrb[16].mxu0 }
 0x174   : > { %v4690_v13 = vpop.f32.mrb[17].mxu0 }
 0x175   : > { %v4691_v9 = vadd.f32 %v4690_v13, %v4689_v35  ;;  %v4692_v4 = vpop.f32.mrb[18].mxu0  ;;  %v4717_v20 = vpop.f32.mrb[16].mxu1 }
 0x176   : > { %v4693_v21 = vpop.f32.mrb[19].mxu0  ;;  %v4718_v31 = vpop.f32.mrb[17].mxu1 }
 0x177   : > { %v3585_v28 = vadd.f32 %v4691_v9, %v3536_v43  ;;  %v4694_v26 = vadd.f32 %v4693_v21, %v4692_v4  ;;  %v4719_v38 = vadd.f32 %v4718_v31, %v4717_v20  ;;  %v4720_v34 = vpop.f32.mrb[18].mxu1 }
 0x178   : > { %v4721_v42 = vpop.f32.mrb[19].mxu1 }
 0x179   : > { %v3588_v39 = vadd.f32 %v4694_v26, %v3539_v63  ;;  %v3634_v41 = vadd.f32 %v4719_v38, %v3585_v28  ;;  %v4722_v23 = vadd.f32 %v4721_v42, %v4720_v34 }
 0x17b   : > { %v3637_v54 = vadd.f32 %v4722_v23, %v3588_v39  ;;  %v4695_v1 = vpop.f32.mrb[20].mxu0 }
 0x17c   : > { %v4696_v49 = vpop.f32.mrb[21].mxu0 }
 0x17d   : > { %v4697_v2 = vadd.f32 %v4696_v49, %v4695_v1  ;;  %v4698_v50 = vpop.f32.mrb[22].mxu0 }
 0x17e   : > { %v4699_v51 = vpop.f32.mrb[23].mxu0 }
 0x17f   : > { %v3593_v47 = vadd.f32 %v4697_v2, %v3544_v36  ;;  %v4700_v14 = vadd.f32 %v4699_v51, %v4698_v50 }
 0x181   : > { %v3596_v60 = vadd.f32 %v4700_v14, %v3547_v27 }
 0x185   : > { %v4723_v30 = vpop.f32.mrb[20].mxu1 }
 0x186   : > { %v4724_v61 = vpop.f32.mrb[21].mxu1 }
 0x187   : > { %v4725_v58 = vadd.f32 %v4724_v61, %v4723_v30  ;;  %v4726_v11 = vpop.f32.mrb[22].mxu1 }
 0x188   : > { %v4727_v57 = vpop.f32.mrb[23].mxu1 }
 0x189   : > { %v3642_v5 = vadd.f32 %v4725_v58, %v3593_v47  ;;  %v4728_v7 = vadd.f32 %v4727_v57, %v4726_v11 }
 0x18b   : > { %v3645_v62 = vadd.f32 %v4728_v7, %v3596_v60 }
 0x193   : > { %v4745_v15 = vpop.f32.mrb[24].mxu0 }
 0x194   : > { %v4746_v0 = vpop.f32.mrb[25].mxu0 }
 0x195   : > { %v4747_v18 = vadd.f32 %v4746_v0, %v4745_v15  ;;  %v4748_v52 = vpop.f32.mrb[26].mxu0  ;;  %v4773_v33 = vpop.f32.mrb[24].mxu1 }
 0x196   : > { %v4749_v44 = vpop.f32.mrb[27].mxu0  ;;  %v4774_v46 = vpop.f32.mrb[25].mxu1 }
 0x197   : > { %v3683_v3 = vadd.f32 %v4747_v18, %v3634_v41  ;;  %v4750_v32 = vadd.f32 %v4749_v44, %v4748_v52  ;;  %v4775_v10 = vadd.f32 %v4774_v46, %v4773_v33  ;;  %v4776_v37 = vpop.f32.mrb[26].mxu1 }
 0x198   : > { %v4777_v29 = vpop.f32.mrb[27].mxu1 }
 0x199   : > { %v3686_v43 = vadd.f32 %v4750_v32, %v3637_v54  ;;  %v3732_v16 = vadd.f32 %v4775_v10, %v3683_v3  ;;  %v4778_v63 = vadd.f32 %v4777_v29, %v4776_v37 }
 0x19b   : > { %v3735_v17 = vadd.f32 %v4778_v63, %v3686_v43 }
 0x19d   : > { %v4779_v40 = vpop.f32.mrb[28].mxu1 }
 0x19e   : > { %v4780_v55 = vpop.f32.mrb[29].mxu1 }
 0x19f   : > { %v4781_v24 = vadd.f32 %v4780_v55, %v4779_v40  ;;  %v4782_v53 = vpop.f32.mrb[30].mxu1 }
 0x1a0   : > { %v4783_v25 = vpop.f32.mrb[31].mxu1 }
 0x1a1   : > { %v4751_v59 = vpop.f32.mrb[28].mxu0  ;;  %v4784_v56 = vadd.f32 %v4783_v25, %v4782_v53 }
 0x1a2   : > { %v4752_v19 = vpop.f32.mrb[29].mxu0 }
 0x1a3   : > { %v4753_v12 = vadd.f32 %v4752_v19, %v4751_v59  ;;  %v4754_v6 = vpop.f32.mrb[30].mxu0 }
 0x1a4   : > { %v4755_v45 = vpop.f32.mrb[31].mxu0 }
 0x1a5   : > { %v3691_v22 = vadd.f32 %v4753_v12, %v3642_v5  ;;  %v4756_v36 = vadd.f32 %v4755_v45, %v4754_v6 }
 0x1a7   : > { %v3694_v48 = vadd.f32 %v4756_v36, %v3645_v62  ;;  %v3740_v27 = vadd.f32 %v4781_v24, %v3691_v22 }
 0x1a9   : > { %v3743_v35 = vadd.f32 %v4784_v56, %v3694_v48 }
 0x1b3   : > { %v4801_v13 = vpop.f32.mrb[32].mxu0 }
 0x1b4   : > { %v4802_v9 = vpop.f32.mrb[33].mxu0 }
 0x1b5   : > { %v4829_v4 = vpop.f32.mrb[32].mxu1  ;;  %v4803_v20 = vadd.f32 %v4802_v9, %v4801_v13  ;;  %v4804_v21 = vpop.f32.mrb[34].mxu0 }
 0x1b6   : > { %v4830_v31 = vpop.f32.mrb[33].mxu1  ;;  %v4805_v28 = vpop.f32.mrb[35].mxu0 }
 0x1b7   : > { %v4831_v26 = vadd.f32 %v4830_v31, %v4829_v4  ;;  %v4832_v38 = vpop.f32.mrb[34].mxu1  ;;  %v3781_v34 = vadd.f32 %v4803_v20, %v3732_v16  ;;  %v4806_v42 = vadd.f32 %v4805_v28, %v4804_v21 }
 0x1b8   : > { %v4833_v39 = vpop.f32.mrb[35].mxu1 }
 0x1b9   : > { %v4834_v41 = vadd.f32 %v4833_v39, %v4832_v38  ;;  %v3784_v23 = vadd.f32 %v4806_v42, %v3735_v17  ;;  %v3830_v54 = vadd.f32 %v4831_v26, %v3781_v34 }
 0x1bb   : > { %v3833_v1 = vadd.f32 %v4834_v41, %v3784_v23  ;;  %v4807_v49 = vpop.f32.mrb[36].mxu0 }
 0x1bc   : > { %v4808_v2 = vpop.f32.mrb[37].mxu0 }
 0x1bd   : > { %v4809_v50 = vadd.f32 %v4808_v2, %v4807_v49  ;;  %v4810_v51 = vpop.f32.mrb[38].mxu0 }
 0x1be   : > { %v4811_v47 = vpop.f32.mrb[39].mxu0 }
 0x1bf   : > { %v3789_v14 = vadd.f32 %v4809_v50, %v3740_v27  ;;  %v4812_v60 = vadd.f32 %v4811_v47, %v4810_v51 }
 0x1c1   : > { %v3792_v30 = vadd.f32 %v4812_v60, %v3743_v35 }
 0x1c8   : > { %v4835_v61 = vpop.f32.mrb[36].mxu1 }
 0x1c9   : > { %v4836_v58 = vpop.f32.mrb[37].mxu1 }
 0x1ca   : > { %v4837_v11 = vadd.f32 %v4836_v58, %v4835_v61  ;;  %v4838_v57 = vpop.f32.mrb[38].mxu1 }
 0x1cb   : > { %v4839_v5 = vpop.f32.mrb[39].mxu1 }
 0x1cc   : > { %v3838_v7 = vadd.f32 %v4837_v11, %v3789_v14  ;;  %v4840_v62 = vadd.f32 %v4839_v5, %v4838_v57 }
 0x1ce   : > { %v3841_v15 = vadd.f32 %v4840_v62, %v3792_v30 }
 0x1d3   : > { %v4857_v0 = vpop.f32.mrb[40].mxu0 }
 0x1d4   : > { %v4858_v18 = vpop.f32.mrb[41].mxu0 }
 0x1d5   : > { %v4885_v52 = vpop.f32.mrb[40].mxu1  ;;  %v4859_v33 = vadd.f32 %v4858_v18, %v4857_v0  ;;  %v4860_v8 = vpop.f32.mrb[42].mxu0 }
 0x1d6   : > { %v4886_v44 = vpop.f32.mrb[41].mxu1  ;;  %v4861_v46 = vpop.f32.mrb[43].mxu0 }
 0x1d7   : > { %v4887_v3 = vadd.f32 %v4886_v44, %v4885_v52  ;;  %v4888_v32 = vpop.f32.mrb[42].mxu1  ;;  %v3879_v10 = vadd.f32 %v4859_v33, %v3830_v54  ;;  %v4862_v37 = vadd.f32 %v4861_v46, %v4860_v8 }
 0x1d8   : > { %v4889_v29 = vpop.f32.mrb[43].mxu1 }
 0x1d9   : > { %v4890_v43 = vadd.f32 %v4889_v29, %v4888_v32  ;;  %v3882_v16 = vadd.f32 %v4862_v37, %v3833_v1  ;;  %v3928_v63 = vadd.f32 %v4887_v3, %v3879_v10 }
 0x1db   : > { %v3931_v17 = vadd.f32 %v4890_v43, %v3882_v16  ;;  %v4863_v40 = vpop.f32.mrb[44].mxu0 }
 0x1dc   : > { %v4864_v55 = vpop.f32.mrb[45].mxu0 }
 0x1dd   : > { %v4865_v24 = vadd.f32 %v4864_v55, %v4863_v40  ;;  %v4866_v53 = vpop.f32.mrb[46].mxu0  ;;  %v4891_v12 = vpop.f32.mrb[44].mxu1 }
 0x1de   : > { %v4867_v25 = vpop.f32.mrb[47].mxu0  ;;  %v4892_v6 = vpop.f32.mrb[45].mxu1 }
 0x1df   : > { %v3887_v59 = vadd.f32 %v4865_v24, %v3838_v7  ;;  %v4868_v56 = vadd.f32 %v4867_v25, %v4866_v53  ;;  %v4893_v45 = vadd.f32 %v4892_v6, %v4891_v12  ;;  %v4894_v22 = vpop.f32.mrb[46].mxu1 }
 0x1e0   : > { %v4895_v36 = vpop.f32.mrb[47].mxu1 }
 0x1e1   : > { %v3890_v19 = vadd.f32 %v4868_v56, %v3841_v15  ;;  %v3936_v48 = vadd.f32 %v4893_v45, %v3887_v59  ;;  %v4896_v27 = vadd.f32 %v4895_v36, %v4894_v22 }
 0x1e3   : > { %v3939_v35 = vadd.f32 %v4896_v27, %v3890_v19 }
 0x1f3   : > { %v4913_v13 = vpop.f32.mrb[48].mxu0 }
 0x1f4   : > { %v4914_v9 = vpop.f32.mrb[49].mxu0 }
 0x1f5   : > { %v4915_v4 = vadd.f32 %v4914_v9, %v4913_v13  ;;  %v4916_v20 = vpop.f32.mrb[50].mxu0  ;;  %v4953_v31 = vpop.f32.mrb[48].mxu1 }
 0x1f6   : > { %v4917_v21 = vpop.f32.mrb[51].mxu0  ;;  %v4025_v38 = vpop.f32.mrb[49].mxu1 }
 0x1f7   : > { %v4918_v28 = vadd.f32 %v4917_v21, %v4916_v20  ;;  %v3977_v26 = vadd.f32 %v4915_v4, %v3928_v63  ;;  %v4954_v34 = vpop.f32.mrb[50].mxu1 }
 0x1f8   : > { %v4028_v41 = vpop.f32.mrb[51].mxu1 }
 0x1f9   : > { %v4026_v42 = vadd.f32 %v4025_v38, %v3977_v26  ;;  %v3980_v39 = vadd.f32 %v4918_v28, %v3931_v17 }
 0x1fb   : > { %v4029_v23 = vadd.f32 %v4028_v41, %v3980_v39  ;;  %v4919_v54 = vpop.f32.mrb[52].mxu0  ;;  %v4079_v1 = vmul.f32 %v4026_v42, %v4026_v42 }
 0x1fc   : > { %v4920_v49 = vpop.f32.mrb[53].mxu0 }
 0x1fd   : > { %v4553_v2 = vpack.c.bf16 %v4029_v23, %v4026_v42  ;;  %v4067_v50 = vadd.f32 %v4029_v23, %v4026_v42  ;;  %v4080_v51 = vmul.f32 %v4029_v23, %v4029_v23  ;;  %v4921_v47 = vadd.f32 %v4920_v49, %v4919_v54  ;;  %v4922_v14 = vpop.f32.mrb[54].mxu0 }
 0x1fe   : > { %v4923_v60 = vpop.f32.mrb[55].mxu0 }
 0x1ff   : > { %4554 = vst [vmem:[%s250_s11] sm:$0xff] %v4553_v2   ;;  %v4083_v30 = vadd.f32 %v4080_v51, %v4079_v1  ;;  %v3985_v61 = vadd.f32 %v4921_v47, %v3936_v48  ;;  %v4924_v58 = vadd.f32 %v4923_v60, %v4922_v14 }
 0x201   : > { %v4034_v11 = vadd.f32 %v4953_v31, %v3985_v61  ;;  %v3988_v57 = vadd.f32 %v4924_v58, %v3939_v35 }
 0x203   : > { %v4068_v5 = vadd.f32 %v4067_v50, %v4034_v11  ;;  %v4081_v7 = vmul.f32 %v4034_v11, %v4034_v11  ;;  %v4037_v62 = vadd.f32 %v4954_v34, %v3988_v57 }
 0x205   : > { %v4084_v15 = vadd.f32 %v4083_v30, %v4081_v7  ;;  %v4558_v0 = vpack.c.bf16 %v4037_v62, %v4034_v11  ;;  %v4069_v18 = vadd.f32 %v4068_v5, %v4037_v62  ;;  %v4082_v52 = vmul.f32 %v4037_v62, %v4037_v62 }
 0x207   : > { %4560 = vst [vmem:[%s250_s11 + $0x8] sm:$0xff] %v4558_v0   ;;  %v4070_v33 = vrot.slane %v4069_v18, 4  ;;  %v4085_v8 = vadd.f32 %v4084_v15, %v4082_v52 }
 0x208   : > { %5315 = shalt.err (!%p5312_p7)
}
 0x209   : > { %s5316_s11 = scalar_lea.hbm %s6358_s13, 256  ;;  %s5320_s10 = scalar_lea.hbm %s6479_s3, 512 }
 0x20a   : > { %p5317_p9 = scmp.ne.s32.totalorder %s6358_s13, %s5316_s11  ;;  %p5321_p2 = scmp.lt.u32.totalorder %s6358_s13, %s6479_s3 }
 0x20b   : > { %p5322_p1 = scmp.lt.u32.totalorder %s5320_s10, %s5316_s11  ;;  %p5324_p8 = scmp.lt.u32.totalorder %s5316_s11, %s6358_s13 }
 0x20c   : > { %p5318_p12 = pnand %p5317_p9, %p6499_p10 }
 0x20d   : > { %p5323_p4 = por %p5322_p1, %p5321_p2 }
 0x20e   : > { %p5319_p0 = pneg %p5318_p12 }
 0x20f   : > { %p5325_p11 = por %p5324_p8, %p5323_p4 }
 0x211   : > { %p5326_p13 = pnand %p5325_p11, %p5319_p0 }
 0x213   : > { %5329 = shalt.err (!%p5326_p13)
}
 0x214   : > { %s5452_s25 = smov 64   ;;  %s5453_s15 = smov 4   ;;  %v4071_v44 = vadd.f32 %v4070_v33, %v4069_v18  ;;  %v4086_v46 = vrot.slane %v4085_v8, 4  ;;  %v4066_v16 = vld [vmem:[%s6344_s27] sm:$0x1] }
 0x215   : > { %4960 = dma.vmem_to_hbm [thread:$0]  (%p6499_p10), %s6353_s12, 256, %s6358_s13, %s4095_s14, %s5452_s25, %s5452_s25, %s5453_s15  }
 0x216   : > { %v4072_v3 = vrot.slane %v4071_v44, 2  ;;  %v4087_v32 = vadd.f32 %v4086_v46, %v4085_v8  ;;  %s4099_s11 = sand.u32 1, %s5517_s24   ;;  %s4541_s7 = sshll.u32 %s5436_s21, 4  ;;  %v4078_v40 = vld [vmem:[%s6348_s29] sm:$0x1] }
 0x217   : > { %s4134_s9 = sshll.u32 %s6344_s27, 4  ;;  %s4147_s17 = sshll.u32 %s6348_s29, 4  ;;  %s6395_s9 = int_to_ptr.vmem [resolvable:$true] %s4134_s9  ;;  %s6403_s17 = int_to_ptr.vmem [resolvable:$true] %s4147_s17 }
 0x218   : > { %v4073_v10 = vadd.f32 %v4072_v3, %v4071_v44  ;;  %v4088_v37 = vrot.slane %v4087_v32, 2  ;;  %s6393_s14 = scalar_lea.hbm %s6480_s4, %s4541_s7  ;;  %s6401_s10 = scalar_lea.hbm %s6481_s5, %s4541_s7 }
 0x219   : > { %s6405_s16 = scalar_lea.sflag [#allocation8], %s4099_s11  ;;  %s5330_s8 = scalar_lea.vmem %s6395_s9, 16 }
 0x21a   : > { %v4074_v29 = vrot.slane %v4073_v10, 1  ;;  %v4089_v43 = vadd.f32 %v4088_v37, %v4087_v32  ;;  %p5331_p3 = scmp.ne.s32.totalorder %s6395_s9, %s5330_s8  ;;  %s5454_s25 = smov [#allocation7]  }
 0x21b   : > { %s5334_s15 = sshll.u32 %s5454_s25, 4  ;;  %s5335_s15 = int_to_ptr.vmem [resolvable:$false] %s5334_s15 }
 0x21c   : > { %v4090_v63 = vrot.slane %v4089_v43, 1  ;;  %v4075_v17 = vadd.f32 %v4074_v29, %v4073_v10  ;;  %p5332_p5 = pnand %p5331_p3, %p6499_p10  ;;  %s5336_s12 = scalar_lea.vmem %s5335_s15, 32 }
 0x21d   : > { %p5337_p7 = scmp.lt.s32.totalorder %s6395_s9, %s5335_s15  ;;  %p5338_p9 = scmp.lt.s32.totalorder %s5336_s12, %s5330_s8 }
 0x21e   : > { %v4091_v55 = vadd.f32 %v4090_v63, %v4089_v43  ;;  %v4076_v24 = vadd.f32 %v4075_v17, %v4066_v16  ;;  %p5333_p6 = pneg %p5332_p5 }
 0x21f   : > { %p5339_p12 = por %p5338_p9, %p5337_p7 }
 0x220   : > { %4077 = vst [vmem:[%s6344_s27] sm:$0x1] %v4076_v24  ;;  %v4092_v53 = vadd.f32 %v4091_v55, %v4078_v40 }
 0x221   : > { %p5340_p0 = pnand %p5339_p12, %p5333_p6 }
 0x223   : > { %5343 = shalt.err (!%p5340_p0)
}
 0x224   : > { %s5344_s27 = scalar_lea.hbm %s6393_s14, 16  ;;  %s5348_s13 = scalar_lea.hbm %s6480_s4, 32 }
 0x225   : > { %p5345_p2 = scmp.ne.s32.totalorder %s6393_s14, %s5344_s27  ;;  %p5349_p8 = scmp.lt.u32.totalorder %s6393_s14, %s6480_s4 }
 0x226   : > { %p5350_p11 = scmp.lt.u32.totalorder %s5348_s13, %s5344_s27  ;;  %p5352_p3 = scmp.lt.u32.totalorder %s5344_s27, %s6393_s14 }
 0x227   : > { %p5346_p1 = pnand %p5345_p2, %p6499_p10 }
 0x228   : > { %p5351_p13 = por %p5350_p11, %p5349_p8 }
 0x229   : > { %p5347_p4 = pneg %p5346_p1 }
 0x22a   : > { %p5353_p5 = por %p5352_p3, %p5351_p13 }
 0x22c   : > { %p5354_p6 = pnand %p5353_p5, %p5347_p4 }
 0x22e   : > { %5357 = shalt.err (!%p5354_p6)
}
 0x22f   : > { %4961 = dma.vmem_to_hbm [thread:$0]  (%p6499_p10), %s6395_s9, 16, %s6393_s14, %s6405_s16   ;;  %4093 = vst [vmem:[%s6348_s29] sm:$0x1] %v4092_v53 }
 0x230   : > { %s5358_s8 = scalar_lea.vmem %s6403_s17, 16  ;;  %s5455_s25 = smov [#allocation9]  }
 0x231   : > { %p5359_p7 = scmp.ne.s32.totalorder %s6403_s17, %s5358_s8  ;;  %s5362_s15 = sshll.u32 %s5455_s25, 4  ;;  %s5363_s15 = int_to_ptr.vmem [resolvable:$false] %s5362_s15 }
 0x232   : > { %s5364_s12 = scalar_lea.vmem %s5363_s15, 32  ;;  %p5365_p0 = scmp.lt.s32.totalorder %s6403_s17, %s5363_s15 }
 0x233   : > { %p5360_p9 = pnand %p5359_p7, %p6499_p10  ;;  %p5366_p2 = scmp.lt.s32.totalorder %s5364_s12, %s5358_s8 }
 0x235   : > { %p5361_p12 = pneg %p5360_p9  ;;  %p5367_p1 = por %p5366_p2, %p5365_p0 }
 0x237   : > { %p5368_p4 = pnand %p5367_p1, %p5361_p12 }
 0x239   : > { %5371 = shalt.err (!%p5368_p4)
}
 0x23a   : > { %s5372_s29 = scalar_lea.hbm %s6401_s10, 16  ;;  %s5376_s27 = scalar_lea.hbm %s6481_s5, 32 }
 0x23b   : > { %p5373_p8 = scmp.ne.s32.totalorder %s6401_s10, %s5372_s29  ;;  %p5377_p3 = scmp.lt.u32.totalorder %s6401_s10, %s6481_s5 }
 0x23c   : > { %p5378_p5 = scmp.lt.u32.totalorder %s5376_s27, %s5372_s29  ;;  %p5380_p7 = scmp.lt.u32.totalorder %s5372_s29, %s6401_s10 }
 0x23d   : > { %p5374_p11 = pnand %p5373_p8, %p6499_p10 }
 0x23e   : > { %p5379_p6 = por %p5378_p5, %p5377_p3 }
 0x23f   : > { %p5375_p13 = pneg %p5374_p11 }
 0x240   : > { %p5381_p9 = por %p5380_p7, %p5379_p6 }
 0x242   : > { %p5382_p12 = pnand %p5381_p9, %p5375_p13 }
 0x244   : > { %5385 = shalt.err (!%p5382_p12)
}
 0x245   : > { %4962 = dma.vmem_to_hbm [thread:$0]  (%p6499_p10), %s6403_s17, 16, %s6401_s10, %s6405_s16  }
 0x246 PF: > { %p4982_p0 = scmp.ge.s32.totalorder %s5444_s23, 2  ;;  %s4159_s13 = sand.u32 1, %s5424_s18  }
 0x247   : > { %p6500_p2 = scmp.ne.s32.totalorder %s6487_s30, 0  ;;  %s4160_s21 = scalar_lea.sflag [#allocation5], %s4159_s13 }
 0x249   : > { %p4971_p1 = pnand %p4982_p0, %p6500_p2 }
 0x24b   : > { %5415 = dma.done.wait (!%p4971_p1), %s4160_s21, 256  }
 0x24c   : > { %5417 = vsyncadd (!%p4971_p1), %s4160_s21, 4294967040  ;;  %s6501_s24 = sadd.s32 4294967294, %s5444_s23  }
 0x24d   : > { %s4168_s8 = sand.u32 1, %s6501_s24  }
 0x24e   : > { %s4169_s25 = scalar_lea.sflag [#allocation8], %s4168_s8 }
 0x24f   : > { %5419 = dma.done.wait (!%p4971_p1), %s4169_s25, 32  }
 0x250   : > { %5421 = vsyncadd (!%p4971_p1), %s4169_s25, 4294967264  ;;  %s23_s23 = sadd.s32 1, %s5444_s23   ;;  %s6502_s18 = smov %s5428_s19 }
 0x251   : > { %p20_p10 = scmp.ge.s32.totalorder %s23_s23, 4   ;;  %s6503_s19 = smov %s5432_s20 }
 0x252   : > { %s6504_s20 = smov %s5544_s6  ;;  %s6505_s21 = smov %s5440_s22 }
 0x253   : > { %s6506_s22 = smov %s6508_s26  ;;  %22 = sbr.rel (!%p20_p10) target bundleno = 7 (0x7), region = 109 }
 0x25a   :  { %4181 = vsyncpa [#allocation4], 1 }
 0x25b   :  { %4183 = vsyncpa [#allocation4 + $0x1], 1 }
 0x25c   :  { %4184 = vsyncpa [#allocation5], 1 }
 0x25d   :  { %4186 = vsyncpa [#allocation5 + $0x1], 1 }
 0x25e   :  { %4187 = vsyncpa [#allocation8], 1 }
 0x25f   :  { %4189 = vsyncpa [#allocation8 + $0x1], 1 }

</bundles_post_ra>
